<compile_context>
chip_gen: v7x
topology: tpu7x:2x2x1
jax: 0.10.0
libtpu: 0.0.40
codegen_flags: <defaults>
</compile_context>

<pallas_src>
import functools

import jax
import jax.numpy as jnp
from jax.experimental import pallas as pl
from jax.experimental.pallas import tpu as pltpu

EPS = 1e-5
LANE = 128


def _round_up(x, m):
    return (x + m - 1) // m * m


def _vmem_limit(block_bytes, scratch_bytes):
    need = 2 * block_bytes + scratch_bytes + (8 << 20)
    return int(min(max(need, 24 << 20), 96 << 20))


# --------------------------------------------------------------------------- #
# Conv kernels: 3x3 conv (stride 1 or 2) as a single K=9*Cin_p matmul on an
# in-VMEM packed LHS built from 9 statically shifted row-windows of the
# phase-decomposed slab (one image x one 128-wide cout block per grid step).
# The accumulator row pitch is Wph = Wo + 2//s; the last Wph-Wo columns of each
# row group are garbage, masked out of the BN statistics and sliced away later.
# --------------------------------------------------------------------------- #

def _pack_taps(x_ref, lhs_ref, *, s, Ho, Wph, pitch, cin_p):
    rows = Ho * Wph
    for kh in range(3):
        for kw in range(3):
            t = kh * 3 + kw
            p = (kh % s) * s + (kw % s)                   # phase index
            r0 = p * pitch + (kh // s) * Wph + (kw // s)  # static row offset
            lhs_ref[:, t * cin_p:(t + 1) * cin_p] = x_ref[r0:r0 + rows, :]


def _conv_kernel(x_ref, w_ref, m_ref, y_ref, s1_ref, s2_ref, lhs_ref,
                 *, s, Ho, Wph, pitch, cin_p):
    _pack_taps(x_ref, lhs_ref, s=s, Ho=Ho, Wph=Wph, pitch=pitch, cin_p=cin_p)
    acc = jnp.dot(lhs_ref[...], w_ref[...], preferred_element_type=jnp.float32)
    y_ref[...] = acc.astype(y_ref.dtype)
    m = m_ref[...]                                        # mask garbage columns
    am = acc * m
    s1_ref[...] = jnp.sum(am, axis=0, keepdims=True)
    s2_ref[...] = jnp.sum(am * acc, axis=0, keepdims=True)


def _conv_sc_kernel(x_ref, w_ref, wsc_ref, m_ref,
                    y_ref, s1_ref, s2_ref, ysc_ref, r1_ref, r2_ref, lhs_ref,
                    *, s, Ho, Wph, pitch, cin_p):
    _pack_taps(x_ref, lhs_ref, s=s, Ho=Ho, Wph=Wph, pitch=pitch, cin_p=cin_p)
    m = m_ref[...]
    acc = jnp.dot(lhs_ref[...], w_ref[...], preferred_element_type=jnp.float32)
    y_ref[...] = acc.astype(y_ref.dtype)
    am = acc * m
    s1_ref[...] = jnp.sum(am, axis=0, keepdims=True)
    s2_ref[...] = jnp.sum(am * acc, axis=0, keepdims=True)
    # Fused 1x1 stride-s shortcut conv: its input is exactly the centre tap
    # (kh = kw = 1), i.e. lane segment 4 of the packed LHS already in VMEM.
    sc = jnp.dot(lhs_ref[:, 4 * cin_p:5 * cin_p], wsc_ref[...],
                 preferred_element_type=jnp.float32)
    ysc_ref[...] = sc.astype(ysc_ref.dtype)
    scm = sc * m
    r1_ref[...] = jnp.sum(scm, axis=0, keepdims=True)
    r2_ref[...] = jnp.sum(scm * sc, axis=0, keepdims=True)


# --------------------------------------------------------------------------- #
# Elementwise kernels: BN(scale/shift) apply (+ residual) + ReLU, per image,
# lane-dense (Cp multiple of 128), compute in f32, bf16/f32 storage.
# --------------------------------------------------------------------------- #

def _bn_relu_kernel(y_ref, sc_ref, sh_ref, o_ref):
    y = y_ref[...].astype(jnp.float32) * sc_ref[...] + sh_ref[...]
    o_ref[...] = jnp.maximum(y, 0.0).astype(o_ref.dtype)


def _bn2_add_relu_kernel(y_ref, r_ref, sc_ref, sh_ref, rsc_ref, rsh_ref, out_ref):
    pre = (y_ref[...].astype(jnp.float32) * sc_ref[...] + sh_ref[...]
           + r_ref[...].astype(jnp.float32) * rsc_ref[...] + rsh_ref[...])
    out_ref[...] = jnp.maximum(pre, 0.0).astype(out_ref.dtype)


def _bn2_add_relu_pre_kernel(y_ref, r_ref, sc_ref, sh_ref, rsc_ref, rsh_ref,
                             pre_ref, out_ref):
    pre = (y_ref[...].astype(jnp.float32) * sc_ref[...] + sh_ref[...]
           + r_ref[...].astype(jnp.float32) * rsc_ref[...] + rsh_ref[...])
    pre_ref[...] = pre.astype(pre_ref.dtype)
    out_ref[...] = jnp.maximum(pre, 0.0).astype(out_ref.dtype)


# --------------------------------------------------------------------------- #
# JAX glue
# --------------------------------------------------------------------------- #

def _phase_slab(x, s, Ho, Wo):
    """Zero-duplication phase decomposition of the spatially padded NHWC input.

    Returns (slab, pitch, Wph) where slab is (N, s*s*pitch, C) with
      slab[n, (rh*s+rw)*pitch + i*Wph + j, :] == x_padded[n, s*i+rh, s*j+rw, :]
    and one zero guard row group per phase so every tap's row window is in bounds.
    """
    N, H, W, C = x.shape
    Hph = 2 // s + Ho
    Wph = 2 // s + Wo
    xp = jnp.pad(x, ((0, 0), (1, Hph * s - H - 1), (1, Wph * s - W - 1), (0, 0)))
    x6 = xp.reshape(N, Hph, s, Wph, s, C).transpose(0, 2, 4, 1, 3, 5)
    x6 = jnp.pad(x6, ((0, 0), (0, 0), (0, 0), (0, 1), (0, 0), (0, 0)))
    pitch = (Hph + 1) * Wph
    return x6.reshape(N, s * s * pitch, C), pitch, Wph


def _row_mask(Ho, Wph, Wo):
    # TODO(synk): generate this in-kernel (iota + mod) to drop the operand entirely.
    return jnp.tile((jnp.arange(Wph) < Wo).astype(jnp.float32), Ho).reshape(Ho * Wph, 1)


def _conv_pass(slab, w, mask, *, s, Ho, Wo, Wph, pitch, wsc=None, tco=LANE):
    del Wo  # validity handled via the precomputed row mask
    N, R, cin_p = slab.shape
    Cp = w.shape[-1]
    n_co = Cp // tco
    L = Ho * Wph

    x_spec = pl.BlockSpec((None, R, cin_p), lambda n, co: (n, 0, 0))
    w_spec = pl.BlockSpec((9 * cin_p, tco), lambda n, co: (0, co))
    m_spec = pl.BlockSpec((L, 1), lambda n, co: (0, 0))
    y_spec = pl.BlockSpec((None, L, tco), lambda n, co: (n, 0, co))
    st_spec = pl.BlockSpec((None, 1, tco), lambda n, co: (n, 0, co))
    y_shape = jax.ShapeDtypeStruct((N, L, Cp), slab.dtype)      # bf16 writeback
    st_shape = jax.ShapeDtypeStruct((N, 1, Cp), jnp.float32)
    scratch = [pltpu.VMEM((L, 9 * cin_p), slab.dtype)]

    blk_bytes = (R * cin_p * 2 + 9 * cin_p * tco * 2 + L * LANE * 4
                 + L * tco * 2 + 2 * 8 * tco * 4)
    scr_bytes = L * 9 * cin_p * 2 + L * tco * 4
    n_convs = 1
    if wsc is not None:
        blk_bytes += cin_p * tco * 2 + L * tco * 2 + 2 * 8 * tco * 4
        scr_bytes += L * tco * 4
        n_convs = 2

    cparams = pltpu.CompilerParams(
        dimension_semantics=("parallel", "parallel"),
        vmem_limit_bytes=_vmem_limit(blk_bytes, scr_bytes))
    cost = pl.CostEstimate(
        flops=2 * N * L * cin_p * Cp * (9 if wsc is None else 10),
        transcendentals=0,
        bytes_accessed=(slab.size * slab.dtype.itemsize
                        + w.size * w.dtype.itemsize
                        + n_convs * N * L * Cp * 2))
    kern_kw = dict(s=s, Ho=Ho, Wph=Wph, pitch=pitch, cin_p=cin_p)

    if wsc is None:
        y, s1, s2 = pl.pallas_call(
            functools.partial(_conv_kernel, **kern_kw),
            out_shape=(y_shape, st_shape, st_shape),
            grid=(N, n_co),
            in_specs=[x_spec, w_spec, m_spec],
            out_specs=(y_spec, st_spec, st_spec),
            scratch_shapes=scratch,
            compiler_params=cparams,
            cost_estimate=cost,
        )(slab, w, mask)
        return y, (s1, s2)

    wsc_spec = pl.BlockSpec((cin_p, tco), lambda n, co: (0, co))
    y, s1, s2, ysc, r1, r2 = pl.pallas_call(
        functools.partial(_conv_sc_kernel, **kern_kw),
        out_shape=(y_shape, st_shape, st_shape, y_shape, st_shape, st_shape),
        grid=(N, n_co),
        in_specs=[x_spec, w_spec, wsc_spec, m_spec],
        out_specs=(y_spec, st_spec, st_spec, y_spec, st_spec, st_spec),
        scratch_shapes=scratch,
        compiler_params=cparams,
        cost_estimate=cost,
    )(slab, w, wsc, mask)
    return y, (s1, s2), ysc, (r1, r2)


def _bn_relu(y, scale, shift, out_dtype):
    N, L, Cp = y.shape
    row = pl.BlockSpec((None, L, Cp), lambda n: (n, 0, 0))
    vec = pl.BlockSpec((1, Cp), lambda n: (0, 0))
    blk = L * Cp * (y.dtype.itemsize + jnp.dtype(out_dtype).itemsize) + 2 * Cp * 4
    return pl.pallas_call(
        _bn_relu_kernel,
        out_shape=jax.ShapeDtypeStruct((N, L, Cp), out_dtype),
        grid=(N,),
        in_specs=[row, vec, vec],
        out_specs=row,
        compiler_params=pltpu.CompilerParams(
            dimension_semantics=("parallel",),
            vmem_limit_bytes=_vmem_limit(blk, 0)),
    )(y, scale, shift)


def _bn2_add_relu(y, resid, scale, shift, rscale, rshift, *, want_pre):
    N, L, Cp = y.shape
    row = pl.BlockSpec((None, L, Cp), lambda n: (n, 0, 0))
    vec = pl.BlockSpec((1, Cp), lambda n: (0, 0))
    out_sh = jax.ShapeDtypeStruct((N, L, Cp), jnp.float32)
    blk = L * Cp * (y.dtype.itemsize + resid.dtype.itemsize
                    + 4 * (2 if want_pre else 1)) + 4 * Cp * 4
    cparams = pltpu.CompilerParams(
        dimension_semantics=("parallel",),
        vmem_limit_bytes=_vmem_limit(blk, 0))
    if want_pre:
        pre, out = pl.pallas_call(
            _bn2_add_relu_pre_kernel,
            out_shape=(out_sh, out_sh),
            grid=(N,),
            in_specs=[row, row, vec, vec, vec, vec],
            out_specs=(row, row),
            compiler_params=cparams,
        )(y, resid, scale, shift, rscale, rshift)
        return pre, out
    out = pl.pallas_call(
        _bn2_add_relu_kernel,
        out_shape=out_sh,
        grid=(N,),
        in_specs=[row, row, vec, vec, vec, vec],
        out_specs=row,
        compiler_params=cparams,
    )(y, resid, scale, shift, rscale, rshift)
    return None, out


def _fold_bn(stats, count, gamma, beta, cp):
    # TODO(synk): single-pass E[x^2]-E[x]^2 is fine in f32 at these scales; switch
    # to a two-pass (subtract-mean) reduction for very large activations.
    s1, s2 = stats                          # each (N, 1, Cp)
    mean = jnp.sum(s1, axis=0) / count      # (1, Cp)
    var = jnp.maximum(jnp.sum(s2, axis=0) / count - mean * mean, 0.0)
    g = jnp.pad(gamma, (0, cp - gamma.shape[0])).reshape(1, cp)
    b = jnp.pad(beta, (0, cp - beta.shape[0])).reshape(1, cp)
    scale = g * jax.lax.rsqrt(var + EPS)
    shift = b - mean * scale
    return scale.astype(jnp.float32), shift.astype(jnp.float32)


def _prep_w3x3(w, cin_p, cout_p, dtype):
    kh, kw, ci, co = w.shape
    wp = jnp.pad(w, ((0, 0), (0, 0), (0, cin_p - ci), (0, cout_p - co)))
    return wp.reshape(kh * kw * cin_p, cout_p).astype(dtype)


def _prep_w1x1(w, cin_p, cout_p, dtype):
    ci, co = w.shape[-2], w.shape[-1]
    return jnp.pad(w.reshape(ci, co), ((0, cin_p - ci), (0, cout_p - co))).astype(dtype)


def basic_block_forward(x, params, *, stride, is_last, compute_dtype=jnp.bfloat16):
    """Pallas implementation of BasicBlock.forward (activations NHWC, weights HWIO)."""
    assert stride in (1, 2), "BasicBlock uses stride 1 or 2"
    N, H, W, Cin = x.shape
    planes = params["w1"].shape[-1]
    Cp = _round_up(planes, LANE)            # lane-dense output channels
    Cin_p = _round_up(Cin, LANE)            # lane-aligned K segments for tap packing
    has_sc = (stride != 1) or (Cin != planes)

    Ho = (H + 2 - 3) // stride + 1
    Wo = (W + 2 - 3) // stride + 1
    M = N * Ho * Wo

    # -- pass A: conv1 (3x3, stride) + fused 1x1 shortcut + BN partial sums
    xp = jnp.pad(x, ((0, 0), (0, 0), (0, 0), (0, Cin_p - Cin))).astype(compute_dtype)
    slab1, pitch1, Wph1 = _phase_slab(xp, stride, Ho, Wo)
    mask1 = _row_mask(Ho, Wph1, Wo)
    w1 = _prep_w3x3(params["w1"], Cin_p, Cp, compute_dtype)
    if has_sc:
        wsc = _prep_w1x1(params["wsc"], Cin_p, Cp, compute_dtype)
        y1, st1, ysc, stsc = _conv_pass(slab1, w1, mask1, s=stride, Ho=Ho, Wo=Wo,
                                        Wph=Wph1, pitch=pitch1, wsc=wsc)
    else:
        y1, st1 = _conv_pass(slab1, w1, mask1, s=stride, Ho=Ho, Wo=Wo,
                             Wph=Wph1, pitch=pitch1)
    scale1, shift1 = _fold_bn(st1, M, params["g1"], params["b1"], Cp)

    # -- pass B: BN1 apply + ReLU directly on the pitched conv1 output (bf16)
    out1 = _bn_relu(y1, scale1, shift1, compute_dtype)

    # -- pass C: conv2 (3x3, stride 1) + BN partial sums (lane-dense K = 9*Cp)
    out1_sp = out1.reshape(N, Ho, Wph1, Cp)[:, :, :Wo, :]
    # TODO(synk): write out1 directly in slab2 layout from the BN kernel
    # (Element-offset out_spec + aliased pre-zeroed buffer) to drop this XLA
    # slice/pad round trip of the largest activation.
    slab2, pitch2, Wph2 = _phase_slab(out1_sp, 1, Ho, Wo)
    mask2 = _row_mask(Ho, Wph2, Wo)
    w2 = _prep_w3x3(params["w2"], Cp, Cp, compute_dtype)
    y2, st2 = _conv_pass(slab2, w2, mask2, s=1, Ho=Ho, Wo=Wo,
                         Wph=Wph2, pitch=pitch2)
    scale2, shift2 = _fold_bn(st2, M, params["g2"], params["b2"], Cp)

    # -- shortcut term (conv+BN already computed in pass A, or identity)
    if has_sc:
        rscale, rshift = _fold_bn(stsc, M, params["gsc"], params["bsc"], Cp)
        resid = ysc.reshape(N, Ho, Wph1, Cp)[:, :, :Wo, :].reshape(N, Ho * Wo, Cp)
    else:
        resid = jnp.pad(x, ((0, 0), (0, 0), (0, 0), (0, Cp - Cin)))
        resid = resid.reshape(N, Ho * Wo, Cp)
        rscale = jnp.ones((1, Cp), jnp.float32)
        rshift = jnp.zeros((1, Cp), jnp.float32)

    # -- pass D: BN2 + BN_shortcut + residual add + ReLU (preact only if needed)
    y2d = y2.reshape(N, Ho, Wph2, Cp)[:, :, :Wo, :].reshape(N, Ho * Wo, Cp)
    pre, out = _bn2_add_relu(y2d, resid, scale2, shift2, rscale, rshift,
                             want_pre=is_last)

    out = out[..., :planes].reshape(N, Ho, Wo, planes)
    if is_last:
        pre = pre[..., :planes].reshape(N, Ho, Wo, planes)
        return out, pre
    return out


# --------------------------- pure-JAX reference ----------------------------- #

def _bn_ref(x, gamma, beta):
    mu = x.mean(axis=(0, 1, 2), keepdims=True)
    var = jnp.square(x - mu).mean(axis=(0, 1, 2), keepdims=True)
    return (x - mu) * jax.lax.rsqrt(var + EPS) * gamma.reshape(1, 1, 1, -1) \
        + beta.reshape(1, 1, 1, -1)


def reference_forward(x, params, *, stride, is_last, compute_dtype=jnp.bfloat16):
    # Mirrors the kernel's precision policy: bf16 MXU inputs, f32 accumulation,
    # bf16 STORAGE of conv outputs / hidden activation, f32 BN/elementwise math.
    dn = ("NHWC", "HWIO", "NHWC")
    conv = functools.partial(jax.lax.conv_general_dilated, dimension_numbers=dn,
                             preferred_element_type=jnp.float32)
    rnd = lambda t: t.astype(compute_dtype).astype(jnp.float32)
    xc = x.astype(compute_dtype)
    c1 = rnd(conv(xc, params["w1"].astype(compute_dtype), (stride, stride),
                  ((1, 1), (1, 1))))
    o1 = jax.nn.relu(_bn_ref(c1, params["g1"], params["b1"]))
    c2 = rnd(conv(o1.astype(compute_dtype), params["w2"].astype(compute_dtype),
                  (1, 1), ((1, 1), (1, 1))))
    o2 = _bn_ref(c2, params["g2"], params["b2"])
    if "wsc" in params:
        cs = rnd(conv(xc, params["wsc"].astype(compute_dtype), (stride, stride),
                      ((0, 0), (0, 0))))
        sc = _bn_ref(cs, params["gsc"], params["bsc"])
    else:
        sc = x
    pre = o2 + sc
    out = jax.nn.relu(pre)
    return (out, pre) if is_last else out


# ---------------------------------- main ------------------------------------ #

def _make_params(key, in_planes, planes, stride):
    ks = jax.random.split(key, 9)
    p = {
        "w1": 0.1 * jax.random.normal(ks[0], (3, 3, in_planes, planes), jnp.float32),
        "g1": 1.0 + 0.1 * jax.random.normal(ks[1], (planes,), jnp.float32),
        "b1": 0.1 * jax.random.normal(ks[2], (planes,), jnp.float32),
        "w2": 0.1 * jax.random.normal(ks[3], (3, 3, planes, planes), jnp.float32),
        "g2": 1.0 + 0.1 * jax.random.normal(ks[4], (planes,), jnp.float32),
        "b2": 0.1 * jax.random.normal(ks[5], (planes,), jnp.float32),
    }
    if stride != 1 or in_planes != planes:
        p["wsc"] = 0.1 * jax.random.normal(ks[6], (1, 1, in_planes, planes), jnp.float32)
        p["gsc"] = 1.0 + 0.1 * jax.random.normal(ks[7], (planes,), jnp.float32)
        p["bsc"] = 0.1 * jax.random.normal(ks[8], (planes,), jnp.float32)
    return p


def _check(name, x, params, stride, is_last):
    got = basic_block_forward(x, params, stride=stride, is_last=is_last)
    got = jax.block_until_ready(got)
    want = reference_forward(x, params, stride=stride, is_last=is_last)
    got_t = got if isinstance(got, tuple) else (got,)
    want_t = want if isinstance(want, tuple) else (want,)
    for g, w in zip(got_t, want_t):
        assert g.shape == w.shape, f"{name}: shape {g.shape} vs {w.shape}"
        err = jnp.max(jnp.abs(g - w))
        assert jnp.allclose(g, w, atol=2e-2, rtol=2e-2), f"{name}: max|diff|={err}"


if __name__ == "__main__":
    key = jax.random.PRNGKey(0)
    k1, k2, k3, k4 = jax.random.split(key, 4)

    # case 1: downsampling block with conv shortcut (stride 2, 4 -> 8 channels)
    x1 = jax.random.normal(k1, (2, 16, 16, 4), jnp.float32)
    p1 = _make_params(k2, 4, 8, 2)
    _check("strided", x1, p1, stride=2, is_last=True)

    # case 2: identity-shortcut block (stride 1, 8 -> 8 channels)
    x2 = jax.random.normal(k3, (2, 8, 8, 8), jnp.float32)
    p2 = _make_params(k4, 8, 8, 1)
    _check("identity", x2, p2, stride=1, is_last=False)

    print("KERNEL_OK")
</pallas_src>

<mosaic_0001>
module attributes {stable_mosaic.version = 11 : i64} {
  func.func @_conv_sc_kernel(%arg0: i32, %arg1: i32, %arg2: memref<1x360x128xbf16, #tpu.memory_space<vmem>>, %arg3: memref<1152x128xbf16, #tpu.memory_space<vmem>>, %arg4: memref<128x128xbf16, #tpu.memory_space<vmem>>, %arg5: memref<72x1xf32, #tpu.memory_space<vmem>>, %arg6: memref<1x72x128xbf16, #tpu.memory_space<vmem>>, %arg7: memref<1x1x128xf32, #tpu.memory_space<vmem>>, %arg8: memref<1x1x128xf32, #tpu.memory_space<vmem>>, %arg9: memref<1x72x128xbf16, #tpu.memory_space<vmem>>, %arg10: memref<1x1x128xf32, #tpu.memory_space<vmem>>, %arg11: memref<1x1x128xf32, #tpu.memory_space<vmem>>, %arg12: memref<72x1152xbf16, #tpu.memory_space<vmem>>) attributes {dimension_semantics = [#tpu.dimension_semantics<parallel>, #tpu.dimension_semantics<parallel>], iteration_bounds = array<i64: 2, 1>, scalar_prefetch = 0 : i64, scratch_operands = 1 : i64, tpu.core_type = #tpu.core_type<tc>, window_params = [{transform_indices = @transform_0, window_bounds = array<i64: 1, 360, 128>}, {transform_indices = @transform_1, window_bounds = array<i64: 1152, 128>}, {transform_indices = @transform_2, window_bounds = array<i64: 128, 128>}, {pipeline_mode = #tpu.pipeline_mode<synchronous>, transform_indices = @transform_3, window_bounds = array<i64: 72, 1>}, {transform_indices = @transform_4, window_bounds = array<i64: 1, 72, 128>}, {transform_indices = @transform_5, window_bounds = array<i64: 1, 1, 128>}, {transform_indices = @transform_6, window_bounds = array<i64: 1, 1, 128>}, {transform_indices = @transform_7, window_bounds = array<i64: 1, 72, 128>}, {transform_indices = @transform_8, window_bounds = array<i64: 1, 1, 128>}, {transform_indices = @transform_9, window_bounds = array<i64: 1, 1, 128>}]} {
    %c0 = arith.constant 0 : index
    %c0_0 = arith.constant 0 : index
    %c0_1 = arith.constant 0 : index
    %0 = vector.load %arg2[%c0, %c0_0, %c0_1] : memref<1x360x128xbf16, #tpu.memory_space<vmem>>, vector<1x72x128xbf16>
    %1 = vector.shape_cast %0 : vector<1x72x128xbf16> to vector<72x128xbf16>
    %c0_2 = arith.constant 0 : index
    %c0_3 = arith.constant 0 : index
    %2 = vector.load %arg12[%c0_2, %c0_3] : memref<72x1152xbf16, #tpu.memory_space<vmem>>, vector<72x128xbf16>
    tpu.vector_store %arg12[%c0_2, %c0_3], %1 {strides = array<i32>} : memref<72x1152xbf16, #tpu.memory_space<vmem>>, vector<72x128xbf16>,
    %c0_4 = arith.constant 0 : index
    %c90 = arith.constant 90 : index
    %c0_5 = arith.constant 0 : index
    %3 = vector.load %arg2[%c0_4, %c90, %c0_5] : memref<1x360x128xbf16, #tpu.memory_space<vmem>>, vector<1x72x128xbf16>
    %4 = vector.shape_cast %3 : vector<1x72x128xbf16> to vector<72x128xbf16>
    %c0_6 = arith.constant 0 : index
    %c128 = arith.constant 128 : index
    %5 = vector.load %arg12[%c0_6, %c128] : memref<72x1152xbf16, #tpu.memory_space<vmem>>, vector<72x128xbf16>
    tpu.vector_store %arg12[%c0_6, %c128], %4 {strides = array<i32>} : memref<72x1152xbf16, #tpu.memory_space<vmem>>, vector<72x128xbf16>,
    %c0_7 = arith.constant 0 : index
    %c1 = arith.constant 1 : index
    %c0_8 = arith.constant 0 : index
    %6 = vector.load %arg2[%c0_7, %c1, %c0_8] : memref<1x360x128xbf16, #tpu.memory_space<vmem>>, vector<1x72x128xbf16>
    %7 = vector.shape_cast %6 : vector<1x72x128xbf16> to vector<72x128xbf16>
    %c0_9 = arith.constant 0 : index
    %c256 = arith.constant 256 : index
    %8 = vector.load %arg12[%c0_9, %c256] : memref<72x1152xbf16, #tpu.memory_space<vmem>>, vector<72x128xbf16>
    tpu.vector_store %arg12[%c0_9, %c256], %7 {strides = array<i32>} : memref<72x1152xbf16, #tpu.memory_space<vmem>>, vector<72x128xbf16>,
    %c0_10 = arith.constant 0 : index
    %c180 = arith.constant 180 : index
    %c0_11 = arith.constant 0 : index
    %9 = vector.load %arg2[%c0_10, %c180, %c0_11] : memref<1x360x128xbf16, #tpu.memory_space<vmem>>, vector<1x72x128xbf16>
    %10 = vector.shape_cast %9 : vector<1x72x128xbf16> to vector<72x128xbf16>
    %c0_12 = arith.constant 0 : index
    %c384 = arith.constant 384 : index
    %11 = vector.load %arg12[%c0_12, %c384] : memref<72x1152xbf16, #tpu.memory_space<vmem>>, vector<72x128xbf16>
    tpu.vector_store %arg12[%c0_12, %c384], %10 {strides = array<i32>} : memref<72x1152xbf16, #tpu.memory_space<vmem>>, vector<72x128xbf16>,
    %c0_13 = arith.constant 0 : index
    %c270 = arith.constant 270 : index
    %c0_14 = arith.constant 0 : index
    %12 = vector.load %arg2[%c0_13, %c270, %c0_14] : memref<1x360x128xbf16, #tpu.memory_space<vmem>>, vector<1x72x128xbf16>
    %13 = vector.shape_cast %12 : vector<1x72x128xbf16> to vector<72x128xbf16>
    %c0_15 = arith.constant 0 : index
    %c512 = arith.constant 512 : index
    %14 = vector.load %arg12[%c0_15, %c512] : memref<72x1152xbf16, #tpu.memory_space<vmem>>, vector<72x128xbf16>
    tpu.vector_store %arg12[%c0_15, %c512], %13 {strides = array<i32>} : memref<72x1152xbf16, #tpu.memory_space<vmem>>, vector<72x128xbf16>,
    %c0_16 = arith.constant 0 : index
    %c181 = arith.constant 181 : index
    %c0_17 = arith.constant 0 : index
    %15 = vector.load %arg2[%c0_16, %c181, %c0_17] : memref<1x360x128xbf16, #tpu.memory_space<vmem>>, vector<1x72x128xbf16>
    %16 = vector.shape_cast %15 : vector<1x72x128xbf16> to vector<72x128xbf16>
    %c0_18 = arith.constant 0 : index
    %c640 = arith.constant 640 : index
    %17 = vector.load %arg12[%c0_18, %c640] : memref<72x1152xbf16, #tpu.memory_space<vmem>>, vector<72x128xbf16>
    tpu.vector_store %arg12[%c0_18, %c640], %16 {strides = array<i32>} : memref<72x1152xbf16, #tpu.memory_space<vmem>>, vector<72x128xbf16>,
    %c0_19 = arith.constant 0 : index
    %c9 = arith.constant 9 : index
    %c0_20 = arith.constant 0 : index
    %18 = vector.load %arg2[%c0_19, %c9, %c0_20] : memref<1x360x128xbf16, #tpu.memory_space<vmem>>, vector<1x72x128xbf16>
    %19 = vector.shape_cast %18 : vector<1x72x128xbf16> to vector<72x128xbf16>
    %c0_21 = arith.constant 0 : index
    %c768 = arith.constant 768 : index
    %20 = vector.load %arg12[%c0_21, %c768] : memref<72x1152xbf16, #tpu.memory_space<vmem>>, vector<72x128xbf16>
    tpu.vector_store %arg12[%c0_21, %c768], %19 {strides = array<i32>} : memref<72x1152xbf16, #tpu.memory_space<vmem>>, vector<72x128xbf16>,
    %c0_22 = arith.constant 0 : index
    %c99 = arith.constant 99 : index
    %c0_23 = arith.constant 0 : index
    %21 = vector.load %arg2[%c0_22, %c99, %c0_23] : memref<1x360x128xbf16, #tpu.memory_space<vmem>>, vector<1x72x128xbf16>
    %22 = vector.shape_cast %21 : vector<1x72x128xbf16> to vector<72x128xbf16>
    %c0_24 = arith.constant 0 : index
    %c896 = arith.constant 896 : index
    %23 = vector.load %arg12[%c0_24, %c896] : memref<72x1152xbf16, #tpu.memory_space<vmem>>, vector<72x128xbf16>
    tpu.vector_store %arg12[%c0_24, %c896], %22 {strides = array<i32>} : memref<72x1152xbf16, #tpu.memory_space<vmem>>, vector<72x128xbf16>,
    %c0_25 = arith.constant 0 : index
    %c10 = arith.constant 10 : index
    %c0_26 = arith.constant 0 : index
    %24 = vector.load %arg2[%c0_25, %c10, %c0_26] : memref<1x360x128xbf16, #tpu.memory_space<vmem>>, vector<1x72x128xbf16>
    %25 = vector.shape_cast %24 : vector<1x72x128xbf16> to vector<72x128xbf16>
    %c0_27 = arith.constant 0 : index
    %c1024 = arith.constant 1024 : index
    %26 = vector.load %arg12[%c0_27, %c1024] : memref<72x1152xbf16, #tpu.memory_space<vmem>>, vector<72x128xbf16>
    tpu.vector_store %arg12[%c0_27, %c1024], %25 {strides = array<i32>} : memref<72x1152xbf16, #tpu.memory_space<vmem>>, vector<72x128xbf16>,
    %c0_28 = arith.constant 0 : index
    %c0_29 = arith.constant 0 : index
    %27 = vector.load %arg5[%c0_28, %c0_29] : memref<72x1xf32, #tpu.memory_space<vmem>>, vector<72x1xf32>
    %c0_30 = arith.constant 0 : index
    %c0_31 = arith.constant 0 : index
    %28 = vector.load %arg12[%c0_30, %c0_31] : memref<72x1152xbf16, #tpu.memory_space<vmem>>, vector<72x1152xbf16>
    %c0_32 = arith.constant 0 : index
    %c0_33 = arith.constant 0 : index
    %29 = vector.load %arg3[%c0_32, %c0_33] : memref<1152x128xbf16, #tpu.memory_space<vmem>>, vector<1152x128xbf16>
    %cst = arith.constant dense<0.000000e+00> : vector<72x128xf32>
    %30 = tpu.matmul %28, %29, %cst {dimension_numbers = #tpu.dot_dimension_numbers<[1], [0], [0], [1], [0, 0, 1, 1], [], []>} : vector<72x1152xbf16>, vector<1152x128xbf16>, vector<72x128xf32> -> vector<72x128xf32>
    %31 = arith.truncf %30 : vector<72x128xf32> to vector<72x128xbf16>
    %c0_34 = arith.constant 0 : index
    %c0_35 = arith.constant 0 : index
    %c0_36 = arith.constant 0 : index
    %32 = vector.load %arg6[%c0_34, %c0_35, %c0_36] : memref<1x72x128xbf16, #tpu.memory_space<vmem>>, vector<1x72x128xbf16>
    %33 = vector.shape_cast %32 : vector<1x72x128xbf16> to vector<72x128xbf16>
    %34 = vector.shape_cast %31 : vector<72x128xbf16> to vector<1x72x128xbf16>
    tpu.vector_store %arg6[%c0_34, %c0_35, %c0_36], %34 {strides = array<i32>} : memref<1x72x128xbf16, #tpu.memory_space<vmem>>, vector<1x72x128xbf16>,
    %35 = vector.broadcast %27 : vector<72x1xf32> to vector<72x128xf32>
    %36 = arith.mulf %30, %35 : vector<72x128xf32>
    %cst_37 = arith.constant dense<0.000000e+00> : vector<128xf32>
    %37 = vector.multi_reduction <add>, %36, %cst_37 [0] : vector<72x128xf32> to vector<128xf32>
    %38 = vector.shape_cast %37 : vector<128xf32> to vector<1x128xf32>
    %c0_38 = arith.constant 0 : index
    %c0_39 = arith.constant 0 : index
    %c0_40 = arith.constant 0 : index
    %39 = vector.load %arg7[%c0_38, %c0_39, %c0_40] : memref<1x1x128xf32, #tpu.memory_space<vmem>>, vector<1x1x128xf32>
    %40 = vector.shape_cast %39 : vector<1x1x128xf32> to vector<1x128xf32>
    %41 = vector.shape_cast %38 : vector<1x128xf32> to vector<1x1x128xf32>
    tpu.vector_store %arg7[%c0_38, %c0_39, %c0_40], %41 {strides = array<i32>} : memref<1x1x128xf32, #tpu.memory_space<vmem>>, vector<1x1x128xf32>,
    %42 = arith.mulf %36, %30 : vector<72x128xf32>
    %cst_41 = arith.constant dense<0.000000e+00> : vector<128xf32>
    %43 = vector.multi_reduction <add>, %42, %cst_41 [0] : vector<72x128xf32> to vector<128xf32>
    %44 = vector.shape_cast %43 : vector<128xf32> to vector<1x128xf32>
    %c0_42 = arith.constant 0 : index
    %c0_43 = arith.constant 0 : index
    %c0_44 = arith.constant 0 : index
    %45 = vector.load %arg8[%c0_42, %c0_43, %c0_44] : memref<1x1x128xf32, #tpu.memory_space<vmem>>, vector<1x1x128xf32>
    %46 = vector.shape_cast %45 : vector<1x1x128xf32> to vector<1x128xf32>
    %47 = vector.shape_cast %44 : vector<1x128xf32> to vector<1x1x128xf32>
    tpu.vector_store %arg8[%c0_42, %c0_43, %c0_44], %47 {strides = array<i32>} : memref<1x1x128xf32, #tpu.memory_space<vmem>>, vector<1x1x128xf32>,
    %c0_45 = arith.constant 0 : index
    %c512_46 = arith.constant 512 : index
    %48 = vector.load %arg12[%c0_45, %c512_46] : memref<72x1152xbf16, #tpu.memory_space<vmem>>, vector<72x128xbf16>
    %c0_47 = arith.constant 0 : index
    %c0_48 = arith.constant 0 : index
    %49 = vector.load %arg4[%c0_47, %c0_48] : memref<128x128xbf16, #tpu.memory_space<vmem>>, vector<128x128xbf16>
    %cst_49 = arith.constant dense<0.000000e+00> : vector<72x128xf32>
    %50 = tpu.matmul %48, %49, %cst_49 {dimension_numbers = #tpu.dot_dimension_numbers<[1], [0], [0], [1], [0, 0, 1, 1], [], []>} : vector<72x128xbf16>, vector<128x128xbf16>, vector<72x128xf32> -> vector<72x128xf32>
    %51 = arith.truncf %50 : vector<72x128xf32> to vector<72x128xbf16>
    %c0_50 = arith.constant 0 : index
    %c0_51 = arith.constant 0 : index
    %c0_52 = arith.constant 0 : index
    %52 = vector.load %arg9[%c0_50, %c0_51, %c0_52] : memref<1x72x128xbf16, #tpu.memory_space<vmem>>, vector<1x72x128xbf16>
    %53 = vector.shape_cast %52 : vector<1x72x128xbf16> to vector<72x128xbf16>
    %54 = vector.shape_cast %51 : vector<72x128xbf16> to vector<1x72x128xbf16>
    tpu.vector_store %arg9[%c0_50, %c0_51, %c0_52], %54 {strides = array<i32>} : memref<1x72x128xbf16, #tpu.memory_space<vmem>>, vector<1x72x128xbf16>,
    %55 = vector.broadcast %27 : vector<72x1xf32> to vector<72x128xf32>
    %56 = arith.mulf %50, %55 : vector<72x128xf32>
    %cst_53 = arith.constant dense<0.000000e+00> : vector<128xf32>
    %57 = vector.multi_reduction <add>, %56, %cst_53 [0] : vector<72x128xf32> to vector<128xf32>
    %58 = vector.shape_cast %57 : vector<128xf32> to vector<1x128xf32>
    %c0_54 = arith.constant 0 : index
    %c0_55 = arith.constant 0 : index
    %c0_56 = arith.constant 0 : index
    %59 = vector.load %arg10[%c0_54, %c0_55, %c0_56] : memref<1x1x128xf32, #tpu.memory_space<vmem>>, vector<1x1x128xf32>
    %60 = vector.shape_cast %59 : vector<1x1x128xf32> to vector<1x128xf32>
    %61 = vector.shape_cast %58 : vector<1x128xf32> to vector<1x1x128xf32>
    tpu.vector_store %arg10[%c0_54, %c0_55, %c0_56], %61 {strides = array<i32>} : memref<1x1x128xf32, #tpu.memory_space<vmem>>, vector<1x1x128xf32>,
    %62 = arith.mulf %56, %50 : vector<72x128xf32>
    %cst_57 = arith.constant dense<0.000000e+00> : vector<128xf32>
    %63 = vector.multi_reduction <add>, %62, %cst_57 [0] : vector<72x128xf32> to vector<128xf32>
    %64 = vector.shape_cast %63 : vector<128xf32> to vector<1x128xf32>
    %c0_58 = arith.constant 0 : index
    %c0_59 = arith.constant 0 : index
    %c0_60 = arith.constant 0 : index
    %65 = vector.load %arg11[%c0_58, %c0_59, %c0_60] : memref<1x1x128xf32, #tpu.memory_space<vmem>>, vector<1x1x128xf32>
    %66 = vector.shape_cast %65 : vector<1x1x128xf32> to vector<1x128xf32>
    %67 = vector.shape_cast %64 : vector<1x128xf32> to vector<1x1x128xf32>
    tpu.vector_store %arg11[%c0_58, %c0_59, %c0_60], %67 {strides = array<i32>} : memref<1x1x128xf32, #tpu.memory_space<vmem>>, vector<1x1x128xf32>,
    return
  }
  func.func @transform_0(%arg0: i32, %arg1: i32) -> (i32, i32, i32) {
    %c0_i32 = arith.constant 0 : i32
    %c0_i32_0 = arith.constant 0 : i32
    %c0_i32_1 = arith.constant 0 : i32
    return %arg0, %c0_i32, %c0_i32_0 : i32, i32, i32
  }
  func.func @transform_1(%arg0: i32, %arg1: i32) -> (i32, i32) {
    %c0_i32 = arith.constant 0 : i32
    %c0_i32_0 = arith.constant 0 : i32
    return %c0_i32, %arg1 : i32, i32
  }
  func.func @transform_2(%arg0: i32, %arg1: i32) -> (i32, i32) {
    %c0_i32 = arith.constant 0 : i32
    %c0_i32_0 = arith.constant 0 : i32
    return %c0_i32, %arg1 : i32, i32
  }
  func.func @transform_3(%arg0: i32, %arg1: i32) -> (i32, i32) {
    %c0_i32 = arith.constant 0 : i32
    %c0_i32_0 = arith.constant 0 : i32
    %c0_i32_1 = arith.constant 0 : i32
    return %c0_i32, %c0_i32_0 : i32, i32
  }
  func.func @transform_4(%arg0: i32, %arg1: i32) -> (i32, i32, i32) {
    %c0_i32 = arith.constant 0 : i32
    %c0_i32_0 = arith.constant 0 : i32
    return %arg0, %c0_i32, %arg1 : i32, i32, i32
  }
  func.func @transform_5(%arg0: i32, %arg1: i32) -> (i32, i32, i32) {
    %c0_i32 = arith.constant 0 : i32
    %c0_i32_0 = arith.constant 0 : i32
    return %arg0, %c0_i32, %arg1 : i32, i32, i32
  }
  func.func @transform_6(%arg0: i32, %arg1: i32) -> (i32, i32, i32) {
    %c0_i32 = arith.constant 0 : i32
    %c0_i32_0 = arith.constant 0 : i32
    return %arg0, %c0_i32, %arg1 : i32, i32, i32
  }
  func.func @transform_7(%arg0: i32, %arg1: i32) -> (i32, i32, i32) {
    %c0_i32 = arith.constant 0 : i32
    %c0_i32_0 = arith.constant 0 : i32
    return %arg0, %c0_i32, %arg1 : i32, i32, i32
  }
  func.func @transform_8(%arg0: i32, %arg1: i32) -> (i32, i32, i32) {
    %c0_i32 = arith.constant 0 : i32
    %c0_i32_0 = arith.constant 0 : i32
    return %arg0, %c0_i32, %arg1 : i32, i32, i32
  }
  func.func @transform_9(%arg0: i32, %arg1: i32) -> (i32, i32, i32) {
    %c0_i32 = arith.constant 0 : i32
    %c0_i32_0 = arith.constant 0 : i32
    return %arg0, %c0_i32, %arg1 : i32, i32, i32
  }
}

</mosaic_0001>

<bundles_post_ra>
// kernel: tpu_custom_call.1
= control target key start
LH: loop header
LB: loop body
LE: loop exit
PB: predicated region body
PF: predicated region fallthrough
CT: control target
= control target key end

     0   :  { %s5289_s0 = inlined_call_operand.hbm [shape: bf16[2,360,128], index: 0, kind: input, shape index: {}]   ;;  %s5290_s1 = inlined_call_operand.hbm [shape: bf16[1152,128], index: 1, kind: input, shape index: {}]   ;;  %s5291_s2 = inlined_call_operand.vmem [shape: bf16[128,128], index: 2, kind: input, shape index: {}]   ;;  %s5292_s3 = inlined_call_operand.vmem [shape: f32[72,1], index: 3, kind: input, shape index: {}]   ;;  %s5293_s4 = inlined_call_operand.hbm [shape: bf16[2,72,128], index: 4, kind: output, shape index: {0}]   ;;  %s5294_s5 = inlined_call_operand.hbm [shape: f32[2,1,128], index: 5, kind: output, shape index: {1}]   ;;  %s5295_s6 = inlined_call_operand.hbm [shape: f32[2,1,128], index: 6, kind: output, shape index: {2}]   ;;  %s5296_s7 = inlined_call_operand.hbm [shape: bf16[2,72,128], index: 7, kind: output, shape index: {3}]   ;;  %s5297_s8 = inlined_call_operand.hbm [shape: f32[2,1,128], index: 8, kind: output, shape index: {4}]   ;;  %s5298_s9 = inlined_call_operand.hbm [shape: f32[2,1,128], index: 9, kind: output, shape index: {5}]  }
   0x1   :  { %5310 = sst [smem:[#allocation25_spill]] %s5289_s0 }
   0x2   :  { %5311 = sst [smem:[#allocation26_spill]] %s5290_s1 }
   0x3   :  { %5312 = sst [smem:[#allocation27_spill]] %s5291_s2 }
   0x4   :  { %5313 = sst [smem:[#allocation28_spill]] %s5292_s3 }
   0x5   :  { %5314 = sst [smem:[#allocation29_spill]] %s5293_s4 }
   0x6   :  { %15 = vsyncpa [#allocation4], 0 }
   0x7   :  { %17 = vsyncpa [#allocation4 + $0x1], 0 }
   0x8   :  { %18 = vsyncpa [#allocation7], 0 }
   0x9   :  { %19 = vsyncpa [#allocation5], 0 }
   0xa   :  { %21 = vsyncpa [#allocation5 + $0x1], 0 }
   0xb   :  { %22 = vsyncpa [#allocation10], 0 }
   0xc   :  { %24 = vsyncpa [#allocation10 + $0x1], 0 }
   0xd   :  { %25 = vsyncpa [#allocation13], 0 }
   0xe   :  { %27 = vsyncpa [#allocation13 + $0x1], 0 }
   0xf   :  { %28 = vsyncpa [#allocation16], 0 }
  0x10   :  { %30 = vsyncpa [#allocation16 + $0x1], 0  ;;  %s4358_s30 = smov 0   ;;  %s4360_s10 = smov 0  }
  0x11   :  { %s4362_s11 = smov 0   ;;  %s4364_s12 = smov 0  }
  0x12   :  { %s4366_s13 = smov 0   ;;  %s4368_s14 = smov 0  }
  0x13 LB: > { %5315 = sst [smem:[#allocation23_spill]] %s4271_s30  ;;  %s4389_s15 = sadd.s32 4294967295, %s4291_s14   ;;  %s4291_s14 = sphi %s4368_s14, %s36_s14   ;;  %s4287_s13 = sphi %s4366_s13, %s5362_s13   ;;  %s4283_s12 = sphi %s4364_s12, %s5361_s12   ;;  %s4279_s11 = sphi %s4362_s11, %s5360_s11   ;;  %s4275_s10 = sphi %s4360_s10, %s5359_s10   ;;  %s4271_s30 = sphi %s4358_s30, %s5358_s30  }
  0x14   : > { %s5299_s16 = sadd.s32 4294967294, %s4291_s14   ;;  %p68_p0 = scmp.ne.s32.totalorder %s4275_s10, %s4271_s30 }
  0x15   : > { %p5300_p1 = scmp.eq.s32.totalorder %s4389_s15, 0  ;;  %p173_p3 = scmp.eq.s32.totalorder %s5299_s16, 1 }
  0x16   : > { %p3229_p5 = scmp.ge.s32.totalorder %s4291_s14, 1  ;;  %p320_p7 = scmp.lt.s32.totalorder %s4291_s14, 3 }
  0x17   : > { %p4400_p4 = por %p5300_p1, %p68_p0  ;;  %p4405_p6 = por %p173_p3, %p68_p0 }
  0x18   : > { %p4410_p8 = pnand %p3229_p5, %p320_p7  ;;  %s4293_s20 = smov [#allocation6]  }
  0x19   : > { %s5316_s17 = scalar_select %p4400_p4, 1, 0 }
  0x1a   : > { %s5317_s18 = scalar_select %p4405_p6, 1, 0 }
  0x1b   : > { %s5319_s19 = scalar_select %p4410_p8, 1, 0 }
  0x1c   : > { %5318 = sst [smem:[#allocation24_spill]] %s5317_s18  ;;  %s334_s21 = sshll.u32 %s4293_s20, 4  ;;  %s335_s21 = int_to_ptr.vmem [resolvable:$true] %s334_s21 }
  0x1d   : > { %p3766_p9 = pneg %p4410_p8  ;;  %s48_s23 = sadd.s32 1, %s4287_s13 }
  0x1e   : > { %s5321_s1 = sld [smem:[#allocation26_spill]] }
  0x1f   : > { %p4419_p11 = pnand %p3766_p9, %p5300_p1 }
  0x21   : > { %p3997_p13 = pneg %p4419_p11 }
  0x24   : > { %s3995_s26 = scalar_lea.hbm %s5321_s1, 9216 }
  0x25   : > { %p3996_p12 = scmp.ne.s32.totalorder %s5321_s1, %s3995_s26  ;;  %p4002_p5 = scmp.lt.u32.totalorder %s3995_s26, %s5321_s1 }
  0x27   : > { %p3998_p0 = pnand %p3997_p13, %p3996_p12 }
  0x29   : > { %p3999_p3 = pneg %p3998_p0 }
  0x2b   : > { %p4004_p7 = pnand %p4002_p5, %p3999_p3 }
  0x2d   : > { %4007 = shalt.err (!%p4004_p7)
}
  0x2e   : > { %s4008_s16 = scalar_lea.vmem %s335_s21, 9216  ;;  %p4016_p2 = scmp.lt.s32.totalorder %s335_s21, %s335_s21 }
  0x2f   : > { %p4009_p9 = scmp.ne.s32.totalorder %s335_s21, %s4008_s16  ;;  %p4017_p6 = scmp.lt.s32.totalorder %s4008_s16, %s4008_s16 }
  0x31   : > { %p4011_p10 = pnand %p4009_p9, %p3997_p13  ;;  %p4018_p4 = por %p4017_p6, %p4016_p2 }
  0x33   : > { %p4012_p1 = pneg %p4011_p10 }
  0x35   : > { %p4019_p8 = pnand %p4018_p4, %p4012_p1 }
  0x37   : > { %4022 = shalt.err (!%p4019_p8)
}
  0x38   : > { %s5303_s24 = smov 64   ;;  %s5304_s25 = smov 4  }
  0x39   : > { %3769 = dma.hbm_to_vmem [thread:$0]  (!%p4419_p11), %s5321_s1, 9216, %s335_s21, [#allocation7], %s5303_s24, %s5303_s24, %s5304_s25  }
  0x3a   : > { %p50_p1 = scmp.ge.s32.totalorder %s48_s23, 2  ;;  %s55_s27 = sadd.s32 1, %s4279_s11 }
  0x3b   : > { %p62_p2 = scmp.ne.s32.totalorder %s4279_s11, %s4275_s10  ;;  %p63_p4 = scmp.eq.s32.totalorder %s4291_s14, 0 }
  0x3c   : > { %s5364_s23 = smov (%p50_p1, %s48_s23), 0  ;;  %p5322_p8 = scmp.eq.s32.totalorder %s4389_s15, 1 }
  0x3d   : > { %p64_p6 = por %p63_p4, %p62_p2  ;;  %s52_s22 = ssub.s32 %s4287_s13, %s5364_s23 }
  0x3e   : > { %p4451_p10 = por %p5322_p8, %p62_p2  ;;  %p3794_p12 = scmp.lt.s32.totalorder %s4291_s14, 2 }
  0x3f   : > { %p53_p13 = scmp.eq.s32.totalorder %s52_s22, 0  ;;  %s358_s29 = sand.u32 1, %s4279_s11  }
  0x40   : > { %s3742_s20 = smul.u32 180, %s358_s29  ;;  %p4463_p11 = pnand %p3794_p12, %p64_p6 }
  0x41   : > { %s4460_s16 = scalar_select %p53_p13, %s4279_s11, %s55_s27  }
  0x42   : > { %s3743_s21 = smul.u32 2880, %s4287_s13  ;;  %s362_s26 = scalar_lea.vmem [#allocation3], %s3742_s20 }
  0x43   : > { %s369_s24 = sshll.u32 %s362_s26, 4  ;;  %s5325_s0 = sld [smem:[#allocation25_spill]]  ;;  %s4472_s24 = int_to_ptr.vmem [resolvable:$true] %s369_s24 }
  0x44   : > { %s4474_s27 = scalar_lea.sflag [#allocation4], %s358_s29  ;;  %p4025_p3 = pneg %p4463_p11 }
  0x49   : > { %s4470_s30 = scalar_lea.hbm %s5325_s0, %s3743_s21  ;;  %s4028_s20 = scalar_lea.hbm %s5325_s0, 5760 }
  0x4a   : > { %s4023_s22 = scalar_lea.hbm %s4470_s30, 2880  ;;  %p4029_p9 = scmp.lt.u32.totalorder %s4470_s30, %s5325_s0 }
  0x4b   : > { %p4024_p0 = scmp.ne.s32.totalorder %s4470_s30, %s4023_s22  ;;  %p4030_p1 = scmp.lt.u32.totalorder %s4028_s20, %s4023_s22 }
  0x4c   : > { %p4032_p4 = scmp.lt.u32.totalorder %s4023_s22, %s4470_s30 }
  0x4d   : > { %p4026_p5 = pnand %p4025_p3, %p4024_p0  ;;  %p4031_p2 = por %p4030_p1, %p4029_p9 }
  0x4f   : > { %p4027_p7 = pneg %p4026_p5  ;;  %p4033_p6 = por %p4032_p4, %p4031_p2 }
  0x51   : > { %p4034_p8 = pnand %p4033_p6, %p4027_p7 }
  0x53   : > { %4037 = shalt.err (!%p4034_p8)
}
  0x54   : > { %s4038_s29 = scalar_lea.vmem %s4472_s24, 2880  ;;  %s4296_s1 = smov [#allocation3]  }
  0x55   : > { %p4039_p12 = scmp.ne.s32.totalorder %s4472_s24, %s4038_s29  ;;  %s4043_s18 = sshll.u32 %s4296_s1, 4  ;;  %s4044_s18 = int_to_ptr.vmem [resolvable:$false] %s4043_s18 }
  0x56   : > { %s4045_s21 = scalar_lea.vmem %s4044_s18, 5760  ;;  %p4046_p5 = scmp.lt.s32.totalorder %s4472_s24, %s4044_s18 }
  0x57   : > { %p4041_p13 = pnand %p4039_p12, %p4025_p3  ;;  %p4047_p9 = scmp.lt.s32.totalorder %s4045_s21, %s4038_s29 }
  0x59   : > { %p4042_p0 = pneg %p4041_p13  ;;  %p4048_p1 = por %p4047_p9, %p4046_p5 }
  0x5b   : > { %p4049_p2 = pnand %p4048_p1, %p4042_p0 }
  0x5d   : > { %4052 = shalt.err (!%p4049_p2)
}
  0x5e   : > { %s5326_s22 = smov 4   ;;  %s5327_s20 = smov 64  }
  0x5f   : > { %3773 = dma.hbm_to_vmem [thread:$0]  (!%p4463_p11), %s4470_s30, 2880, %s4472_s24, %s4474_s27, %s5327_s20, %s5327_s20, %s5326_s22  }
  0x60   : > { %p5328_p3 = scmp.ne.s32.totalorder %s5319_s19, 0 }
  0x61   : > { %s4508_s26 = sand.u32 (!%p5328_p3), 1, %s4275_s10   ;;  %p5329_p7 = scmp.ne.s32.totalorder (!%p5328_p3), %s5316_s17, 0 }
  0x62   : > { %381 = sbr.rel (%p5328_p3) target bundleno = 649 (0x289), region = 36  ;;  %s384_s1 = scalar_lea.sflag (!%p5328_p3), [#allocation4], %s4508_s26 }
  0x63   : > { %s3744_s29 = smul.u32 (!%p5328_p3), 180, %s4508_s26 }
  0x65   : > { %s4512_s18 = scalar_lea.vmem (!%p5328_p3), [#allocation3], %s3744_s29 }
  0x69   : > { %4246 = dma.done.wait (%p5329_p7), %s384_s1, 2880  }
  0x6a   : > { %4248 = vsyncadd (%p5329_p7), %s384_s1, 4294964416  ;;  %p5330_p11 = scmp.eq.s32.totalorder %s4389_s15, 0 }
  0x6c   : > { %4250 = dma.done.wait (%p5330_p11), [#allocation7], 9216   ;;  %p5331_p4 = pmov %p5330_p11 }
  0x6d   : > { %v3855_v0 = vld [vmem:[#allocation6 + $0x40] sm:$0xff]   ;;  %v3859_v4 = vld [vmem:[#allocation6 + $0x48] sm:$0xff]   ;;  %v3863_v8 = vld [vmem:[#allocation6 + $0x50] sm:$0xff]   ;;  %vm494_vm0 = vcmask 1042432   ;;  %vm495_vm1 = vcmask 1046532   ;;  %vm688_vm4 = vcmask 1041408  }
  0x6e   : > { %4252 = vsyncadd (%p5331_p4), [#allocation7], 4294958080  ;;  %v3856_v1 = vld [vmem:[#allocation6 + $0xc0] sm:$0xff]   ;;  %3460 = vmatprep.subr.bf16.mxu0 %v3855_v0  ;;  %v3860_v5 = vld [vmem:[#allocation6 + $0xc8] sm:$0xff]   ;;  %vm553_vm3 = vsmask.f32 3328 }
  0x6f   : > { %v3857_v2 = vld [vmem:[#allocation6] sm:$0xff]   ;;  %3506 = vmatprep.subr.bf16.mxu1 %v3856_v1  ;;  %v3861_v6 = vld [vmem:[#allocation6 + $0x8] sm:$0xff]   ;;  %v3864_v9 = vld [vmem:[#allocation6 + $0xd0] sm:$0xff]   ;;  %vm689_vm5 = vcmask 1045508   ;;  %vm554_vm6 = vsmask.f32 7440 }
  0x70   : > { %v3858_v3 = vld [vmem:[#allocation6 + $0x80] sm:$0xff]   ;;  %3461 = vmatpush3.bf16.msra.mxu0 %v3857_v2  ;;  %v3862_v7 = vld [vmem:[#allocation6 + $0x88] sm:$0xff]   ;;  %v3865_v10 = vld [vmem:[#allocation6 + $0x10] sm:$0xff]   ;;  %vm757_vm9 = vcmask 1040384   ;;  %vm758_vm10 = vcmask 1044484   ;;  %s5344_s2 = sld [smem:[#allocation27_spill]] }
  0x71   : > { %3507 = vmatpush3.bf16.msra.mxu1 %v3858_v3  ;;  %3462 = vmatprep.subr.bf16.mxu0 %v3859_v4  ;;  %v3866_v11 = vld [vmem:[#allocation6 + $0x90] sm:$0xff]   ;;  %v3867_v12 = vld [vmem:[#allocation6 + $0x58] sm:$0xff]   ;;  %v3871_v16 = vld [vmem:[#allocation6 + $0x60] sm:$0xff]   ;;  %vm816_vm12 = vsmask.f32 1280  ;;  %s5345_s3 = sld [smem:[#allocation28_spill]] }
  0x72   : > { %3508 = vmatprep.subr.bf16.mxu1 %v3860_v5  ;;  %v3868_v13 = vld [vmem:[#allocation6 + $0xd8] sm:$0xff]   ;;  %v3872_v17 = vld [vmem:[#allocation6 + $0xe0] sm:$0xff]   ;;  %v3875_v20 = vld [vmem:[#allocation6 + $0x68] sm:$0xff]   ;;  %vm817_vm13 = vsmask.f32 5392  ;;  %s3746_s25 = smul.u32 576, %s4283_s12 }
  0x73   : > { %v3869_v14 = vld [vmem:[#allocation6 + $0x18] sm:$0xff]   ;;  %v3873_v18 = vld [vmem:[#allocation6 + $0x20] sm:$0xff]   ;;  %v3876_v21 = vld [vmem:[#allocation6 + $0xe8] sm:$0xff]   ;;  %vm1067_vm14 = vsmask.f32 2304  ;;  %s5346_s4 = sld [smem:[#allocation29_spill]] }
  0x74   : > { %3463 = vmatpush3.bf16.msra.mxu0 %v3861_v6  ;;  %v3870_v15 = vld [vmem:[#allocation6 + $0x98] sm:$0xff]   ;;  %v3874_v19 = vld [vmem:[#allocation6 + $0xa0] sm:$0xff]   ;;  %v3877_v22 = vld [vmem:[#allocation6 + $0x28] sm:$0xff]   ;;  %vm1068_vm15 = vsmask.f32 6416 }
  0x75   : > { %3509 = vmatpush3.bf16.msra.mxu1 %v3862_v7  ;;  %3464 = vmatprep.subr.bf16.mxu0 %v3863_v8  ;;  %v3878_v23 = vld [vmem:[#allocation6 + $0xa8] sm:$0xff]   ;;  %v3879_v24 = vld [vmem:[#allocation6 + $0x70] sm:$0xff]   ;;  %vm4522_vm2 = vmor %vm494_vm0, %vm495_vm1 }
  0x76   : > { %3510 = vmatprep.subr.bf16.mxu1 %v3864_v9  ;;  %v3880_v25 = vld [vmem:[#allocation6 + $0xf0] sm:$0xff]   ;;  %v3883_v29 = vld [vmem:[#allocation6 + $0x78] sm:$0xff]   ;;  %v476_v37 = vld [vmem:[%s4512_s18 + $0x34] sm:$0xf] }
  0x77   : > { %v3881_v27 = vld [vmem:[#allocation6 + $0x30] sm:$0xff]   ;;  %v3884_v30 = vld [vmem:[#allocation6 + $0xf8] sm:$0xff]   ;;  %v3893_v39 = vld [vmem:[#allocation6 + $0x140] sm:$0xff]   ;;  %v502_v41 = vrot.slane %v476_v37, 5 }
  0x78   : > { %3465 = vmatpush3.bf16.msra.mxu0 %v3865_v10  ;;  %v3882_v28 = vld [vmem:[#allocation6 + $0xb0] sm:$0xff]   ;;  %v3885_v31 = vld [vmem:[#allocation6 + $0x38] sm:$0xff]   ;;  %vm4543_vm7 = vmor %vm688_vm4, %vm689_vm5 }
  0x79   : > { %3511 = vmatpush3.bf16.msra.mxu1 %v3866_v11  ;;  %3466 = vmatprep.subr.bf16.mxu0 %v3867_v12  ;;  %v3886_v32 = vld [vmem:[#allocation6 + $0xb8] sm:$0xff]   ;;  %v545_v44 = vld [vmem:[%s4512_s18 + $0x8] sm:$0xf]  ;;  %v668_v52 = vld [vmem:[%s4512_s18 + $0x58] sm:$0xc]  ;;  %v504_v11 = vrot.slane %v502_v41, 4  ;;  %s5042_s29 = scalar_lea.hbm %s5346_s4, %s3746_s25 }
  0x7a   : > { %3512 = vmatprep.subr.bf16.mxu1 %v3868_v13  ;;  %v456_v33 = vld [vmem:[%s4512_s18] sm:$0xf]  ;;  %v457_v34 = vld [vmem:[%s4512_s18 + $0x4] sm:$0xf]  ;;  %v474_v35 = vld [vmem:[%s4512_s18 + $0x2c] sm:$0xe] }
  0x7b   : > { %465 = vst [vmem:[#allocation2] sm:$0xf] %v456_v33  ;;  %466 = vst [vmem:[#allocation2 + $0x24] sm:$0xf] %v457_v34  ;;  %v475_v36 = vld [vmem:[%s4512_s18 + $0x30] sm:$0xf] }
  0x7c   : > { %3467 = vmatpush3.bf16.msra.mxu0 %v3869_v14  ;;  %v3236_v38 = vrot.slane %v474_v35, 9  ;;  %v499_v40 = vrot.slane %v475_v36, 5  ;;  %v543_v42 = vld [vmem:[%s4512_s18] sm:$0xf]  ;;  %v544_v43 = vld [vmem:[%s4512_s18 + $0x4] sm:$0xf]  ;;  %vm4549_vm8 = vmor %vm553_vm3, %vm554_vm6 }
  0x7d   : > { %3513 = vmatpush3.bf16.msra.mxu1 %v3870_v15  ;;  %3468 = vmatprep.subr.bf16.mxu0 %v3871_v16  ;;  %v557_v45 = vshrl.u32 %v543_v42, 16  ;;  %v560_v46 = vshll.u32 %v543_v42, 16  ;;  %v566_v47 = vshll.u32 %v544_v43, 16  ;;  %v570_v48 = vshrl.u32 %v544_v43, 16  ;;  %v669_v57 = vld [vmem:[%s4512_s18 + $0x5c] sm:$0xf]  ;;  %vm4629_vm11 = vmor %vm757_vm9, %vm758_vm10 }
  0x7e   : > { %3514 = vmatprep.subr.bf16.mxu1 %v3872_v17  ;;  %v500_v49 = vsel %vm4522_vm2, %v3236_v38, %v499_v40  ;;  %v501_v50 = vrot.slane %v499_v40, 4  ;;  %v576_v51 = vshll.u32 %v545_v44, 16  ;;  %v580_v60 = vshrl.u32 %v545_v44, 16  ;;  %v670_v61 = vld [vmem:[%s4512_s18 + $0x60] sm:$0xf]  ;;  %v3895_v0 = vld [vmem:[#allocation6 + $0x1c0] sm:$0xff]   ;;  %vm4663_vm0 = vmor %vm816_vm12, %vm817_vm13 }
  0x7f   : > { %534 = vst [vmem:[#allocation2 + $0x4] sm:$0xf] %v500_v49  ;;  %v559_v53 = vrot.slane %v557_v45, 4  ;;  %v562_v54 = vrot.slane %v560_v46, 5  ;;  %v568_v55 = vrot.slane %v566_v47, 5  ;;  %v572_v56 = vrot.slane %v570_v48, 4  ;;  %vm4695_vm1 = vmor %vm1067_vm14, %vm1068_vm15 }
  0x80   : > { %3469 = vmatpush3.bf16.msra.mxu0 %v3873_v18  ;;  %v503_v58 = vsel %vm4522_vm2, %v501_v50, %v502_v41  ;;  %v578_v59 = vrot.slane %v576_v51, 5  ;;  %v3237_v63 = vrot.slane %v668_v52, 10  ;;  %v693_v3 = vrot.slane %v669_v57, 6  ;;  %v3894_v18 = vld [vmem:[#allocation6 + $0x100] sm:$0xff]   ;;  %v671_v34 = vld [vmem:[%s4512_s18 + $0x64] sm:$0xf] }
  0x81   : > { %3515 = vmatpush3.bf16.msra.mxu1 %v3874_v19  ;;  %3470 = vmatprep.subr.bf16.mxu0 %v3875_v20  ;;  %535 = vst [vmem:[#allocation2 + $0x28] sm:$0xf] %v503_v58  ;;  %v563_v1 = vor.u32 %v562_v54, %v559_v53  ;;  %v573_v2 = vor.u32 %v572_v56, %v568_v55  ;;  %v696_v4 = vrot.slane %v670_v61, 6  ;;  %v582_v6 = vrot.slane %v580_v60, 4  ;;  %v3897_v19 = vld [vmem:[#allocation6 + $0x148] sm:$0xff]   ;;  %v3896_v40 = vld [vmem:[#allocation6 + $0x180] sm:$0xff]  }
  0x82   : > { %3516 = vmatprep.subr.bf16.mxu1 %v3876_v21  ;;  %v694_v9 = vsel %vm4543_vm7, %v3237_v63, %v693_v3  ;;  %v695_v10 = vrot.slane %v693_v3, 4  ;;  %v458_v20 = vld [vmem:[%s4512_s18 + $0x8] sm:$0xf]  ;;  %v459_v21 = vld [vmem:[%s4512_s18 + $0xc] sm:$0xf]  ;;  %v3898_v35 = vld [vmem:[#allocation6 + $0x108] sm:$0xff]  }
  0x83   : > { %v564_v7 = vrot.slane %v563_v1, 4  ;;  %v574_v8 = vrot.slane %v573_v2, 4  ;;  %v583_v12 = vor.u32 %v582_v6, %v578_v59  ;;  %v698_v13 = vrot.slane %v696_v4, 4  ;;  %728 = vst [vmem:[#allocation2 + $0xc] sm:$0xf] %v694_v9  ;;  %v3903_v48 = vld [vmem:[#allocation6 + $0x1c8] sm:$0xff]  }
  0x84   : > { %3471 = vmatpush3.bf16.msra.mxu0 %v3877_v22  ;;  %v697_v16 = vsel %vm4543_vm7, %v695_v10, %v696_v4  ;;  %v477_v22 = vld [vmem:[%s4512_s18 + $0x38] sm:$0xf]  ;;  %467 = vst [vmem:[#allocation2 + $0x48] sm:$0xf] %v458_v20  ;;  %468 = vst [vmem:[#allocation2 + $0x6c] sm:$0xf] %v459_v21 }
  0x85   : > { %3517 = vmatpush3.bf16.msra.mxu1 %v3878_v23  ;;  %3472 = vmatprep.subr.bf16.mxu0 %v3879_v24  ;;  %v569_v14 = vsel %vm4549_vm8, %v564_v7, %v568_v55  ;;  %v579_v15 = vsel %vm4549_vm8, %v574_v8, %v578_v59  ;;  %v584_v17 = vrot.slane %v583_v12, 4  ;;  %729 = vst [vmem:[#allocation2 + $0x30] sm:$0xf] %v697_v16  ;;  %v3887_v23 = vld [vmem:[#allocation2] ss:$36 sps:$4 sm:$0xff]   ;;  %v3905_v59 = vld [vmem:[#allocation6 + $0x188] sm:$0xff]  }
  0x86   : > { %3518 = vmatprep.subr.bf16.mxu1 %v3880_v25  ;;  %659 = vst [vmem:[#allocation2 + $0x8] sm:$0xf] %v569_v14  ;;  %660 = vst [vmem:[#allocation2 + $0x2c] sm:$0xf] %v579_v15  ;;  %v505_v25 = vrot.slane %v477_v22, 5  ;;  %v3906_v55 = vld [vmem:[#allocation6 + $0x150] sm:$0xff]  }
  0x87   : > { %v672_v38 = vld [vmem:[%s4512_s18 + $0x68] sm:$0xf]  ;;  %v461_v6 = vld [vmem:[%s4512_s18 + $0x14] sm:$0xf]  ;;  %v479_v10 = vld [vmem:[%s4512_s18 + $0x40] sm:$0xf] }
  0x88   : > { %3473 = vmatpush3.bf16.msra.mxu0 %v3881_v27  ;;  %v3889_v24 = vld [vmem:[#allocation2 + $0x4] ss:$36 sps:$4 sm:$0xff]   ;;  %v478_v27 = vld [vmem:[%s4512_s18 + $0x3c] sm:$0xf]  ;;  %v702_v43 = vrot.slane %v672_v38, 6  ;;  %vm4299_vm3 = vmmov 0  }
  0x89   : > { %3519 = vmatpush3.bf16.msra.mxu1 %v3882_v28  ;;  %3474 = vmatprep.subr.bf16.mxu0 %v3883_v29  ;;  %v546_v28 = vld [vmem:[%s4512_s18 + $0xc] sm:$0xf]  ;;  %v547_v29 = vld [vmem:[%s4512_s18 + $0x10] sm:$0xf]  ;;  %v3907_v57 = vld [vmem:[#allocation6 + $0x110] sm:$0xff]  }
  0x8a   : > { %3520 = vmatprep.subr.bf16.mxu1 %v3884_v30  ;;  %2130 = vmatprep.mubr.bf16.mxu0 %v3889_v24  ;;  %v506_v30 = vsel %vm4522_vm2, %v504_v11, %v505_v25  ;;  %v586_v33 = vshll.u32 %v546_v28, 16  ;;  %v590_v36 = vshrl.u32 %v546_v28, 16  ;;  %v596_v37 = vshll.u32 %v547_v29, 16  ;;  %v3908_v63 = vld [vmem:[#allocation6 + $0x1d0] sm:$0xff]   ;;  %470 = vst [vmem:[#allocation2 + $0xb4] sm:$0xf] %v461_v6 }
  0x8b   : > { %536 = vst [vmem:[#allocation2 + $0x4c] sm:$0xf] %v506_v30  ;;  %v600_v46 = vshrl.u32 %v547_v29, 16  ;;  %v3909_v4 = vld [vmem:[#allocation6 + $0x190] sm:$0xff]   ;;  %v704_v8 = vrot.slane %v702_v43, 4 }
  0x8c   : > { %3475 = vmatpush3.bf16.msra.mxu0 %v3885_v31  ;;  %v507_v31 = vrot.slane %v505_v25, 4  ;;  %v588_v42 = vrot.slane %v586_v33, 5  ;;  %v592_v45 = vrot.slane %v590_v36, 4  ;;  %v3892_v49 = vld [vmem:[#allocation2 + $0xc] ss:$36 sps:$4 sm:$0xff]   ;;  %v598_v51 = vrot.slane %v596_v37, 5 }
  0x8d   : > { %3521 = vmatpush3.bf16.msra.mxu1 %v3886_v32  ;;  %3552 = vmatprep.subr.bf16.mxu0 %v3893_v39  ;;  %v508_v32 = vrot.slane %v478_v27, 5  ;;  %v699_v39 = vrot.slane %v671_v34, 6  ;;  %v3890_v44 = vld [vmem:[#allocation2 + $0x8] ss:$36 sps:$4 sm:$0xff]   ;;  %v602_v60 = vrot.slane %v600_v46, 4 }
  0x8e   : > { %3598 = vmatprep.subr.bf16.mxu1 %v3895_v0  ;;  %v589_v50 = vsel %vm4549_vm8, %v584_v17, %v588_v42  ;;  %v593_v53 = vor.u32 %v592_v45, %v588_v42  ;;  %2202 = vmatprep.mubr.bf16.mxu1 %v3892_v49  ;;  %v460_v0 = vld [vmem:[%s4512_s18 + $0x10] sm:$0xf]  ;;  %v480_v11 = vld [vmem:[%s4512_s18 + $0x44] sm:$0xf]  ;;  %v548_v12 = vld [vmem:[%s4512_s18 + $0x14] sm:$0xf] }
  0x8f   : > { %2131 = vmatmul.mubr.bf16.vlgmr.msra.gmra.mrb[0].mxu0 %v3887_v23  ;;  %v509_v41 = vsel %vm4522_vm2, %v507_v31, %v508_v32  ;;  %v700_v47 = vsel %vm4543_vm7, %v698_v13, %v699_v39  ;;  %v701_v52 = vrot.slane %v699_v39, 4  ;;  %661 = vst [vmem:[#allocation2 + $0x50] sm:$0xf] %v589_v50  ;;  %v510_v1 = vrot.slane %v508_v32, 4  ;;  %469 = vst [vmem:[#allocation2 + $0x90] sm:$0xf] %v460_v0 }
  0x90   : > { %3553 = vmatpush3.bf16.msra.mxu0 %v3894_v18  ;;  %537 = vst [vmem:[#allocation2 + $0x70] sm:$0xf] %v509_v41  ;;  %730 = vst [vmem:[#allocation2 + $0x54] sm:$0xf] %v700_v47  ;;  %2203 = vmatmul.mubr.bf16.vlgmr.msra.gmra.mrb[0].mxu1 %v3890_v44  ;;  %v594_v56 = vrot.slane %v593_v53, 4  ;;  %v603_v7 = vor.u32 %v602_v60, %v598_v51  ;;  %v511_v13 = vrot.slane %v479_v10, 5 }
  0x91   : > { %3554 = vmatprep.subr.bf16.mxu0 %v3897_v19  ;;  %v703_v54 = vsel %vm4543_vm7, %v701_v52, %v702_v43  ;;  %3599 = vmatpush3.bf16.msra.mxu1 %v3896_v40  ;;  %v514_v14 = vrot.slane %v480_v11, 5  ;;  %v549_v15 = vld [vmem:[%s4512_s18 + $0x18] sm:$0xf]  ;;  %v606_v17 = vshll.u32 %v548_v12, 16  ;;  %v610_v18 = vshrl.u32 %v548_v12, 16  ;;  %v3914_v33 = vld [vmem:[#allocation6 + $0x158] sm:$0xff]  }
  0x92   : > { %731 = vst [vmem:[#allocation2 + $0x78] sm:$0xf] %v703_v54  ;;  %v1271_v58 = vld [vmem:[#allocation2 + $0x48] sm:$0xff]  ;;  %v599_v61 = vsel %vm4549_vm8, %v594_v56, %v598_v51  ;;  %3600 = vmatprep.subr.bf16.mxu1 %v3903_v48  ;;  %v604_v16 = vrot.slane %v603_v7, 4  ;;  %v616_v19 = vshll.u32 %v549_v15, 16  ;;  %v620_v20 = vshrl.u32 %v549_v15, 16 }
  0x93   : > { %662 = vst [vmem:[#allocation2 + $0x74] sm:$0xf] %v599_v61  ;;  %v673_v21 = vld [vmem:[%s4512_s18 + $0x6c] sm:$0xf]  ;;  %v512_v22 = vsel %vm4522_vm2, %v510_v1, %v511_v13  ;;  %v513_v23 = vrot.slane %v511_v13, 4  ;;  %v608_v27 = vrot.slane %v606_v17, 5 }
  0x94   : > { %3555 = vmatpush3.bf16.msra.mxu0 %v3898_v35  ;;  %v674_v24 = vld [vmem:[%s4512_s18 + $0x70] sm:$0xf]  ;;  %v705_v25 = vrot.slane %v673_v21, 6  ;;  %538 = vst [vmem:[#allocation2 + $0x94] sm:$0xf] %v512_v22  ;;  %v612_v28 = vrot.slane %v610_v18, 4 }
  0x95   : > { %3556 = vmatprep.subr.bf16.mxu0 %v3906_v55  ;;  %3601 = vmatpush3.bf16.msra.mxu1 %v3905_v59  ;;  %v708_v29 = vrot.slane %v674_v24, 6  ;;  %v515_v30 = vsel %vm4522_vm2, %v513_v23, %v514_v14  ;;  %v609_v36 = vsel %vm4549_vm8, %v604_v16, %v608_v27  ;;  %v618_v38 = vrot.slane %v616_v19, 5  ;;  %v3916_v40 = vld [vmem:[#allocation6 + $0x118] sm:$0xff]   ;;  %v3919_v46 = vld [vmem:[#allocation6 + $0x160] sm:$0xff]   ;;  %v463_v55 = vld [vmem:[%s4512_s18 + $0x1c] sm:$0xf] }
  0x96   : > { %3602 = vmatprep.subr.bf16.mxu1 %v3908_v63  ;;  %v706_v31 = vsel %vm4543_vm7, %v704_v8, %v705_v25  ;;  %v707_v32 = vrot.slane %v705_v25, 4  ;;  %539 = vst [vmem:[#allocation2 + $0xb8] sm:$0xf] %v515_v30  ;;  %v613_v37 = vor.u32 %v612_v28, %v608_v27  ;;  %663 = vst [vmem:[#allocation2 + $0x98] sm:$0xf] %v609_v36  ;;  %v622_v41 = vrot.slane %v620_v20, 4 }
  0x97   : > { %v1276_v2 = vld [vmem:[#allocation2 + $0x6c] sm:$0xff]  ;;  %732 = vst [vmem:[#allocation2 + $0x9c] sm:$0xf] %v706_v31  ;;  %v3917_v43 = vld [vmem:[#allocation6 + $0x1d8] sm:$0xff]   ;;  %v516_v52 = vrot.slane %v514_v14, 4  ;;  %v710_v56 = vrot.slane %v708_v29, 4 }
  0x98   : > { %v3899_v3 = vld [vmem:[#allocation2 + $0x4c] ss:$36 sps:$4 sm:$0xff]   ;;  %3557 = vmatpush3.bf16.msra.mxu0 %v3907_v57  ;;  %v3249_v9 = vcombine.low %v1271_v58, %v1276_v2  ;;  %v709_v39 = vsel %vm4543_vm7, %v707_v32, %v708_v29  ;;  %v614_v42 = vrot.slane %v613_v37, 4  ;;  %v3918_v44 = vld [vmem:[#allocation6 + $0x198] sm:$0xff]   ;;  %v623_v47 = vor.u32 %v622_v41, %v618_v38  ;;  %472 = vst [vmem:[#allocation2 + $0xfc] sm:$0xf] %v463_v55 }
  0x99   : > { %2138 = vmatprep.mubr.bf16.mxu0 %v3899_v3  ;;  %3603 = vmatpush3.bf16.msra.mxu1 %v3909_v4  ;;  %v3901_v34 = vld [vmem:[#allocation2 + $0x54] ss:$36 sps:$4 sm:$0xff]   ;;  %733 = vst [vmem:[#allocation2 + $0xc0] sm:$0xf] %v709_v39  ;;  %v3920_v49 = vld [vmem:[#allocation6 + $0x120] sm:$0xff]   ;;  %v3932_v32 = vld [vmem:[#allocation6 + $0x170] sm:$0xff]  }
  0x9a   : > { %2139 = vmatmul.mubr.bf16.gmra.mrb[4].mxu0 %v3249_v9  ;;  %v3904_v35 = vld [vmem:[#allocation2 + $0x50] ss:$36 sps:$4 sm:$0xff]   ;;  %3558 = vmatprep.subr.bf16.mxu0 %v3914_v33  ;;  %v619_v45 = vsel %vm4549_vm8, %v614_v42, %v618_v38  ;;  %v481_v58 = vld [vmem:[%s4512_s18 + $0x48] sm:$0xf]  ;;  %v624_v60 = vrot.slane %v623_v47, 4 }
  0x9b   : > { %2210 = vmatprep.mubr.bf16.mxu1 %v3901_v34  ;;  %3604 = vmatprep.subr.bf16.mxu1 %v3917_v43  ;;  %v1281_v48 = vld [vmem:[#allocation2 + $0x90] sm:$0xff]  ;;  %664 = vst [vmem:[#allocation2 + $0xbc] sm:$0xf] %v619_v45  ;;  %v517_v61 = vrot.slane %v481_v58, 5  ;;  %v551_v1 = vld [vmem:[%s4512_s18 + $0x20] sm:$0xf] }
  0x9c   : > { %2211 = vmatmul.mubr.bf16.gmra.mrb[4].mxu1 %v3904_v35  ;;  %3559 = vmatpush3.bf16.msra.mxu0 %v3916_v40  ;;  %v3921_v50 = vld [vmem:[#allocation6 + $0x1e0] sm:$0xff]   ;;  %v550_v0 = vld [vmem:[%s4512_s18 + $0x1c] sm:$0xf]  ;;  %v636_v4 = vshll.u32 %v551_v1, 16  ;;  %v640_v6 = vshrl.u32 %v551_v1, 16  ;;  %v3940_v58 = vld [vmem:[#allocation6 + $0x178] sm:$0xff]  }
  0x9d   : > { %3605 = vmatpush3.bf16.msra.mxu1 %v3918_v44  ;;  %3560 = vmatprep.subr.bf16.mxu0 %v3919_v46  ;;  %v462_v51 = vld [vmem:[%s4512_s18 + $0x18] sm:$0xf]  ;;  %v1286_v53 = vld [vmem:[#allocation2 + $0xb4] sm:$0xff]  ;;  %v482_v59 = vld [vmem:[%s4512_s18 + $0x4c] sm:$0xf]  ;;  %v626_v2 = vshll.u32 %v550_v0, 16  ;;  %v518_v8 = vsel %vm4522_vm2, %v516_v52, %v517_v61 }
  0x9e   : > { %v3910_v54 = vld [vmem:[#allocation2 + $0x94] ss:$36 sps:$4 sm:$0xff]   ;;  %471 = vst [vmem:[#allocation2 + $0xd8] sm:$0xf] %v462_v51  ;;  %v3258_v57 = vcombine.low %v1281_v48, %v1286_v53  ;;  %3606 = vmatprep.subr.bf16.mxu1 %v3921_v50  ;;  %v520_v63 = vrot.slane %v482_v59, 5  ;;  %v630_v3 = vshrl.u32 %v550_v0, 16 }
  0x9f   : > { %2146 = vmatprep.mubr.bf16.mxu0 %v3910_v54  ;;  %v675_v7 = vld [vmem:[%s4512_s18 + $0x74] sm:$0xf]  ;;  %v519_v9 = vrot.slane %v517_v61, 4  ;;  %v676_v10 = vld [vmem:[%s4512_s18 + $0x78] sm:$0xf]  ;;  %v628_v14 = vrot.slane %v626_v2, 5 }
  0xa0   : > { %3561 = vmatpush3.bf16.msra.mxu0 %v3920_v49  ;;  %v711_v11 = vrot.slane %v675_v7, 6  ;;  %v3912_v12 = vld [vmem:[#allocation2 + $0x9c] ss:$36 sps:$4 sm:$0xff]   ;;  %540 = vst [vmem:[#allocation2 + $0xdc] sm:$0xf] %v518_v8  ;;  %v632_v16 = vrot.slane %v630_v3, 4 }
  0xa1   : > { %v521_v15 = vsel %vm4522_vm2, %v519_v9, %v520_v63  ;;  %v3926_v18 = vld [vmem:[#allocation6 + $0x1a0] sm:$0xff]   ;;  %v3928_v19 = vld [vmem:[#allocation6 + $0x168] sm:$0xff]   ;;  %2218 = vmatprep.mubr.bf16.mxu1 %v3912_v12  ;;  %v629_v20 = vsel %vm4549_vm8, %v624_v60, %v628_v14  ;;  %v714_v22 = vrot.slane %v676_v10, 6  ;;  %v638_v24 = vrot.slane %v636_v4, 5  ;;  %v552_v41 = vld [vmem:[%s4512_s18 + $0x24] sm:$0x1] }
  0xa2   : > { %2147 = vmatmul.mubr.bf16.gmra.mrb[8].mxu0 %v3258_v57  ;;  %v3915_v13 = vld [vmem:[#allocation2 + $0x98] ss:$36 sps:$4 sm:$0xff]   ;;  %v712_v17 = vsel %vm4543_vm7, %v710_v56, %v711_v11  ;;  %541 = vst [vmem:[#allocation2 + $0x100] sm:$0xf] %v521_v15  ;;  %v713_v21 = vrot.slane %v711_v11, 4  ;;  %v633_v23 = vor.u32 %v632_v16, %v628_v14  ;;  %3562 = vmatprep.subr.bf16.mxu0 %v3928_v19  ;;  %v642_v29 = vrot.slane %v640_v6, 4 }
  0xa3   : > { %734 = vst [vmem:[#allocation2 + $0xe4] sm:$0xf] %v712_v17  ;;  %665 = vst [vmem:[#allocation2 + $0xe0] sm:$0xf] %v629_v20  ;;  %v3929_v25 = vld [vmem:[#allocation6 + $0x128] sm:$0xff]   ;;  %3607 = vmatpush3.bf16.msra.mxu1 %v3926_v18  ;;  %v522_v33 = vrot.slane %v520_v63, 4 }
  0xa4   : > { %2219 = vmatmul.mubr.bf16.gmra.mrb[8].mxu1 %v3915_v13  ;;  %v715_v27 = vsel %vm4543_vm7, %v713_v21, %v714_v22  ;;  %v3930_v28 = vld [vmem:[#allocation6 + $0x1e8] sm:$0xff]   ;;  %v634_v30 = vrot.slane %v633_v23, 4  ;;  %3563 = vmatpush3.bf16.msra.mxu0 %v3929_v25  ;;  %v643_v34 = vor.u32 %v642_v29, %v638_v24  ;;  %v716_v39 = vrot.slane %v714_v22, 4  ;;  %v3935_v48 = vld [vmem:[#allocation6 + $0x130] sm:$0xff]   ;;  %v3941_v59 = vld [vmem:[#allocation6 + $0x138] sm:$0xff]  }
  0xa5   : > { %735 = vst [vmem:[#allocation2 + $0x108] sm:$0xf] %v715_v27  ;;  %v3931_v31 = vld [vmem:[#allocation6 + $0x1a8] sm:$0xff]   ;;  %3608 = vmatprep.subr.bf16.mxu1 %v3930_v28  ;;  %3564 = vmatprep.subr.bf16.mxu0 %v3932_v32  ;;  %v646_v46 = vshll.u32 %v552_v41, 16  ;;  %v3938_v54 = vld [vmem:[#allocation6 + $0x1f0] sm:$0xff]   ;;  %v4297_v56 = vmov 0  }
  0xa6   : > { %v639_v36 = vsel %vm4549_vm8, %v634_v30, %v638_v24  ;;  %v464_v37 = vld [vmem:[%s4512_s18 + $0x20] sm:$0xf]  ;;  %v483_v38 = vld [vmem:[%s4512_s18 + $0x50] sm:$0x1]  ;;  %v644_v42 = vrot.slane %v643_v34, 4  ;;  %v3939_v55 = vld [vmem:[#allocation6 + $0x1b0] sm:$0xff]   ;;  %3853 = vset.pattern.permute.xlu0 %v4297_v56  ;;  %3854 = vset.pattern.permute.xlu1 %v4297_v56 }
  0xa7   : > { %v1291_v35 = vld [vmem:[#allocation2 + $0xd8] sm:$0xff]  ;;  %666 = vst [vmem:[#allocation2 + $0x104] sm:$0xf] %v639_v36  ;;  %3609 = vmatpush3.bf16.msra.mxu1 %v3931_v31  ;;  %473 = vst [vmem:[#allocation2 + $0x120] sm:$0xf] %v464_v37  ;;  %v523_v40 = vrot.slane %v483_v38, 5 }
  0xa8   : > { %v677_v43 = vld [vmem:[%s4512_s18 + $0x7c] sm:$0x3]  ;;  %v648_v52 = vrot.slane %v646_v46, 5  ;;  %3565 = vmatpush3.bf16.msra.mxu0 %v3935_v48  ;;  %3610 = vmatprep.subr.bf16.mxu1 %v3938_v54  ;;  %v3942_v61 = vld [vmem:[#allocation6 + $0x1f8] sm:$0xff]   ;;  %v4298_v0 = vmov 0.0  }
  0xa9   : > { %v1296_v44 = vld [vmem:[#allocation2 + $0xfc] sm:$0xff]  ;;  %v717_v47 = vrot.slane %v677_v43, 6  ;;  %v524_v50 = vsel %vm4522_vm2, %v522_v33, %v523_v40  ;;  %3566 = vmatprep.subr.bf16.mxu0 %v3940_v58  ;;  %v3943_v63 = vld [vmem:[#allocation6 + $0x1b8] sm:$0xff]   ;;  %v1058_v41 = vld [vmem:[%s4512_s18 + $0x34] sm:$0xf] }
  0xaa   : > { %v3922_v45 = vld [vmem:[#allocation2 + $0xdc] ss:$36 sps:$4 sm:$0xff]   ;;  %v3267_v49 = vcombine.low %v1291_v35, %v1296_v44  ;;  %542 = vst [vmem:[#allocation2 + $0x124] sm:$0xf] %v524_v50  ;;  %v649_v57 = vsel %vm4549_vm8, %v644_v42, %v648_v52  ;;  %v4641_v7 = vld [vmem:[%s4512_s18 + $0x8c] sm:$0xf] }
  0xab   : > { %2154 = vmatprep.mubr.bf16.mxu0 %v3922_v45  ;;  %v718_v53 = vsel %vm4543_vm7, %v716_v39, %v717_v47  ;;  %667 = vst [vmem:[#allocation2 + $0x128] sm:$0xf] %v649_v57  ;;  %3611 = vmatpush3.bf16.msra.mxu1 %v3939_v55  ;;  %v737_v2 = vld [vmem:[%s4512_s18 + $0x84] sm:$0x8]  ;;  %v738_v3 = vld [vmem:[%s4512_s18 + $0x88] sm:$0xf] }
  0xac   : > { %2155 = vmatmul.mubr.bf16.gmra.mrb[12].mxu0 %v3267_v49  ;;  %736 = vst [vmem:[#allocation2 + $0x12c] sm:$0xf] %v718_v53  ;;  %v3924_v62 = vld [vmem:[#allocation2 + $0xe4] ss:$36 sps:$4 sm:$0xff]   ;;  %3612 = vmatprep.subr.bf16.mxu1 %v3942_v61  ;;  %v3238_v8 = vrot.slane %v737_v2, 11  ;;  %v762_v9 = vrot.slane %v738_v3, 7 }
  0xad   : > { %3567 = vmatpush3.bf16.msra.mxu0 %v3941_v59  ;;  %2226 = vmatprep.mubr.bf16.mxu1 %v3924_v62  ;;  %v806_v10 = vld [vmem:[%s4512_s18 + $0x58] sm:$0xc]  ;;  %v765_v11 = vrot.slane %v4641_v7, 7  ;;  %v807_v12 = vld [vmem:[%s4512_s18 + $0x5c] sm:$0xf] }
  0xae   : > { %v3927_v60 = vld [vmem:[#allocation2 + $0xe0] ss:$36 sps:$4 sm:$0xff]   ;;  %3670 = vmatprep.subr.bf16.mxu0 %v4298_v0  ;;  %v820_v14 = vshrl.u32 %v806_v10, 16  ;;  %v763_v16 = vsel %vm4629_vm11, %v3238_v8, %v762_v9  ;;  %v764_v17 = vrot.slane %v762_v9, 4  ;;  %v823_v18 = vshll.u32 %v806_v10, 16 }
  0xaf   : > { %2227 = vmatmul.mubr.bf16.gmra.mrb[12].mxu1 %v3927_v60  ;;  %v808_v13 = vld [vmem:[%s4512_s18 + $0x60] sm:$0xf]  ;;  %v829_v19 = vshrl.u32 %v807_v12, 16  ;;  %v935_v20 = vld [vmem:[%s4512_s18 + $0x4] sm:$0xf]  ;;  %v832_v24 = vshll.u32 %v807_v12, 16 }
  0xb0   : > { %3613 = vmatpush3.bf16.msra.mxu1 %v3943_v63  ;;  %797 = vst [vmem:[#allocation2 + $0x10] sm:$0xf] %v763_v16  ;;  %v822_v23 = vrot.slane %v820_v14, 6  ;;  %v936_v25 = vld [vmem:[%s4512_s18 + $0x8] sm:$0xf]  ;;  %v766_v27 = vsel %vm4629_vm11, %v764_v17, %v765_v11  ;;  %v825_v28 = vrot.slane %v823_v18, 7 }
  0xb1   : > { %v1301_v1 = vld [vmem:[#allocation2 + $0x120] sm:$0xff]  ;;  %3706 = vmatprep.subr.bf16.mxu1 %v4298_v0  ;;  %v831_v29 = vrot.slane %v829_v19, 6  ;;  %v839_v30 = vshrl.u32 %v808_v13, 16  ;;  %798 = vst [vmem:[#allocation2 + $0x34] sm:$0xf] %v766_v27  ;;  %v834_v32 = vrot.slane %v832_v24, 7 }
  0xb2   : > { %v3277_v4 = vcombine.high %v1301_v1, %v1301_v1  ;;  %v3276_v6 = vcombine.low %v1301_v1, %v1301_v1  ;;  %v4657_v31 = vld [vmem:[%s4512_s18 + $0xc] sm:$0xf]  ;;  %v842_v33 = vshll.u32 %v808_v13, 16  ;;  %v946_v34 = vshrl.u32 %v935_v20, 16  ;;  %v1057_v36 = vld [vmem:[%s4512_s18 + $0x30] sm:$0xe] }
  0xb3   : > { %v1302_v15 = vld [vmem:[#allocation2 + $0x128] sm:$0xff]  ;;  %v949_v35 = vshll.u32 %v935_v20, 16  ;;  %v826_v37 = vor.u32 %v825_v28, %v822_v23  ;;  %v841_v38 = vrot.slane %v839_v30, 6  ;;  %v955_v39 = vshll.u32 %v936_v25, 16  ;;  %v1059_v47 = vld [vmem:[%s4512_s18 + $0x38] sm:$0xf] }
  0xb4   : > { %2162 = vmatprep.mubr.bf16.mxu0 %v3277_v4  ;;  %v3279_v21 = vcombine.high %v1302_v15, %v1302_v15  ;;  %v3278_v22 = vcombine.low %v1302_v15, %v1302_v15  ;;  %v959_v40 = vshrl.u32 %v936_v25, 16  ;;  %v835_v43 = vor.u32 %v834_v32, %v831_v29  ;;  %v740_v2 = vld [vmem:[%s4512_s18 + $0x90] sm:$0xf]  ;;  %v4681_v9 = vld [vmem:[%s4512_s18 + $0x94] sm:$0xf] }
  0xb5   : > { %2163 = vmatmul.mubr.bf16.gmra.mrb[16].mxu0 %v3276_v6  ;;  %v844_v44 = vrot.slane %v842_v33, 7  ;;  %v948_v45 = vrot.slane %v946_v34, 4  ;;  %v951_v46 = vrot.slane %v949_v35, 5  ;;  %v827_v48 = vrot.slane %v826_v37, 4  ;;  %v809_v15 = vld [vmem:[%s4512_s18 + $0x64] sm:$0xf] }
  0xb6   : > { %2234 = vmatprep.mubr.bf16.mxu1 %v3279_v21  ;;  %v957_v49 = vrot.slane %v955_v39, 5  ;;  %v961_v50 = vrot.slane %v959_v40, 4  ;;  %v965_v52 = vshll.u32 %v4657_v31, 16  ;;  %v837_v53 = vrot.slane %v835_v43, 4  ;;  %v810_v24 = vld [vmem:[%s4512_s18 + $0x68] sm:$0xf] }
  0xb7   : > { %2235 = vmatmul.mubr.bf16.gmra.mrb[16].mxu1 %v3278_v22  ;;  %v4669_v54 = vor.u32 %v844_v44, %v841_v38  ;;  %v952_v55 = vor.u32 %v951_v46, %v948_v45  ;;  %v969_v56 = vshrl.u32 %v4657_v31, 16  ;;  %v836_v57 = vsel %vm4663_vm0, %v827_v48, %v835_v43  ;;  %v938_v33 = vld [vmem:[%s4512_s18 + $0x10] sm:$0xf]  ;;  %v4706_v34 = vld [vmem:[%s4512_s18 + $0x14] sm:$0xf] }
  0xb8   : > { %v962_v58 = vor.u32 %v961_v50, %v957_v49  ;;  %v4674_v59 = vrot.slane %v965_v52, 5  ;;  %v1071_v62 = vshrl.u32 %v1057_v36, 16  ;;  %926 = vst [vmem:[#allocation2 + $0x14] sm:$0xf] %v836_v57  ;;  %v1074_v63 = vshll.u32 %v1057_v36, 16  ;;  %v3950_v36 = vld [vmem:[#allocation6 + $0x200] sm:$0xff]  }
  0xb9   : > { %v846_v60 = vsel %vm4663_vm0, %v837_v53, %v4669_v54  ;;  %v953_v61 = vrot.slane %v952_v55, 4  ;;  %v1080_v1 = vshrl.u32 %v1058_v41, 16  ;;  %v1083_v6 = vshll.u32 %v1058_v41, 16  ;;  %v3944_v40 = vld [vmem:[#allocation2 + $0x10] ss:$36 sps:$4 sm:$0xff]  }
  0xba   : > { %927 = vst [vmem:[#allocation2 + $0x38] sm:$0xf] %v846_v60  ;;  %v963_v3 = vrot.slane %v962_v58, 4  ;;  %v1073_v4 = vrot.slane %v1071_v62, 5  ;;  %v1090_v8 = vshrl.u32 %v1059_v47, 16  ;;  %v1076_v12 = vrot.slane %v1074_v63, 6 }
  0xbb   : > { %v958_v10 = vsel %vm4549_vm8, %v953_v61, %v957_v49  ;;  %v1082_v13 = vrot.slane %v1080_v1, 5  ;;  %v1093_v14 = vshll.u32 %v1059_v47, 16  ;;  %v1085_v17 = vrot.slane %v1083_v6, 6  ;;  %v1060_v46 = vld [vmem:[%s4512_s18 + $0x3c] sm:$0xf] }
  0xbc   : > { %v968_v16 = vsel %vm4549_vm8, %v963_v3, %v4674_v59  ;;  %1048 = vst [vmem:[#allocation2 + $0x18] sm:$0xf] %v958_v10  ;;  %v1092_v18 = vrot.slane %v1090_v8, 5  ;;  %v767_v19 = vrot.slane %v765_v11, 4  ;;  %v1077_v20 = vor.u32 %v1076_v12, %v1073_v4  ;;  %v1061_v52 = vld [vmem:[%s4512_s18 + $0x40] sm:$0xf] }
  0xbd   : > { %1049 = vst [vmem:[#allocation2 + $0x3c] sm:$0xf] %v968_v16  ;;  %v1095_v21 = vrot.slane %v1093_v14, 6  ;;  %v768_v22 = vrot.slane %v740_v2, 7  ;;  %v771_v23 = vrot.slane %v4681_v9, 7  ;;  %v1086_v27 = vor.u32 %v1085_v17, %v1082_v13 }
  0xbe   : > { %v847_v28 = vrot.slane %v4669_v54, 4  ;;  %v849_v7 = vshrl.u32 %v809_v15, 16  ;;  %v852_v11 = vshll.u32 %v809_v15, 16  ;;  %v1078_v29 = vrot.slane %v1077_v20, 4  ;;  %v742_v10 = vld [vmem:[%s4512_s18 + $0x98] sm:$0xf] }
  0xbf   : > { %v4700_v30 = vor.u32 %v1095_v21, %v1092_v18  ;;  %v769_v31 = vsel %vm4629_vm11, %v767_v19, %v768_v22  ;;  %v770_v32 = vrot.slane %v768_v22, 4  ;;  %v1088_v35 = vrot.slane %v1086_v27, 4  ;;  %v4735_v16 = vld [vmem:[%s4512_s18 + $0x9c] sm:$0xf]  ;;  %v811_v17 = vld [vmem:[%s4512_s18 + $0x6c] sm:$0xf] }
  0xc0   : > { %799 = vst [vmem:[#allocation2 + $0x58] sm:$0xf] %v769_v31  ;;  %v851_v37 = vrot.slane %v849_v7, 6  ;;  %v854_v38 = vrot.slane %v852_v11, 7  ;;  %v859_v39 = vshrl.u32 %v810_v24, 16  ;;  %v1087_v43 = vsel %vm4695_vm1, %v1078_v29, %v1086_v27  ;;  %v3951_v18 = vld [vmem:[%s5344_s2] sm:$0xff]  }
  0xc1   : > { %v3946_v41 = vld [vmem:[#allocation2 + $0x14] ss:$36 sps:$4 sm:$0xff]   ;;  %v772_v44 = vsel %vm4629_vm11, %v770_v32, %v771_v23  ;;  %v862_v45 = vshll.u32 %v810_v24, 16  ;;  %v1097_v47 = vsel %vm4695_vm1, %v1088_v35, %v4700_v30  ;;  %1177 = vst [vmem:[#allocation2 + $0x1c] sm:$0xf] %v1087_v43  ;;  %v971_v50 = vrot.slane %v969_v56, 4 }
  0xc2   : > { %800 = vst [vmem:[#allocation2 + $0x7c] sm:$0xf] %v772_v44  ;;  %v855_v48 = vor.u32 %v854_v38, %v851_v37  ;;  %v861_v49 = vrot.slane %v859_v39, 6  ;;  %2274 = vmatprep.mubr.bf16.mxu0 %v3946_v41  ;;  %1178 = vst [vmem:[#allocation2 + $0x40] sm:$0xf] %v1097_v47  ;;  %v975_v54 = vshll.u32 %v938_v33, 16 }
  0xc3   : > { %v864_v53 = vrot.slane %v862_v45, 7  ;;  %v979_v55 = vshrl.u32 %v938_v33, 16  ;;  %v985_v57 = vshll.u32 %v4706_v34, 16  ;;  %2275 = vmatmul.mubr.bf16.vlgmr.msra.gmra.mrb[20].mxu0 %v3944_v40  ;;  %v972_v60 = vor.u32 %v971_v50, %v4674_v59  ;;  %v3952_v56 = vld [vmem:[#allocation6 + $0x208] sm:$0xff]   ;;  %v3959_v11 = vld [vmem:[#allocation6 + $0x210] sm:$0xff]   ;;  %v3966_v44 = vld [vmem:[#allocation6 + $0x218] sm:$0xff]  }
  0xc4   : > { %v856_v58 = vsel %vm4663_vm0, %v847_v28, %v855_v48  ;;  %v857_v62 = vrot.slane %v855_v48, 4  ;;  %v989_v61 = vshrl.u32 %v4706_v34, 16  ;;  %3671 = vmatpush3.bf16.msra.mxu0 %v3950_v36  ;;  %v977_v1 = vrot.slane %v975_v54, 5  ;;  %v812_v24 = vld [vmem:[%s4512_s18 + $0x70] sm:$0xf] }
  0xc5   : > { %v4724_v63 = vor.u32 %v864_v53, %v861_v49  ;;  %928 = vst [vmem:[#allocation2 + $0x5c] sm:$0xf] %v856_v58  ;;  %v981_v2 = vrot.slane %v979_v55, 4  ;;  %v4726_v3 = vrot.slane %v985_v57, 5  ;;  %3672 = vmatprep.subr.bf16.mxu0 %v4298_v0  ;;  %v973_v4 = vrot.slane %v972_v60, 4  ;;  %v3958_v53 = vld [vmem:[%s5344_s2 + $0x8] sm:$0xff]  }
  0xc6   : > { %v1098_v6 = vrot.slane %v4700_v30, 4  ;;  %v1100_v59 = vshrl.u32 %v1060_v46, 16  ;;  %v1103_v8 = vshll.u32 %v1060_v46, 16  ;;  %v1110_v14 = vshrl.u32 %v1061_v52, 16  ;;  %v3947_v30 = vld [vmem:[#allocation2 + $0x18] ss:$36 sps:$4 sm:$0xff]  }
  0xc7   : > { %v866_v12 = vsel %vm4663_vm0, %v857_v62, %v4724_v63  ;;  %v982_v13 = vor.u32 %v981_v2, %v977_v1  ;;  %v1113_v15 = vshll.u32 %v1061_v52, 16  ;;  %v978_v19 = vsel %vm4549_vm8, %v973_v4, %v977_v1  ;;  %v940_v37 = vld [vmem:[%s4512_s18 + $0x18] sm:$0xf]  ;;  %v4760_v43 = vld [vmem:[%s4512_s18 + $0x1c] sm:$0xf] }
  0xc8   : > { %929 = vst [vmem:[#allocation2 + $0x80] sm:$0xf] %v866_v12  ;;  %v1102_v20 = vrot.slane %v1100_v59, 5  ;;  %v1105_v21 = vrot.slane %v1103_v8, 6  ;;  %v773_v22 = vrot.slane %v771_v23, 4  ;;  %3673 = vmatpush3.bf16.msra.mxu0 %v3952_v56  ;;  %v1112_v28 = vrot.slane %v1110_v14, 5 }
  0xc9   : > { %v983_v27 = vrot.slane %v982_v13, 4  ;;  %1050 = vst [vmem:[#allocation2 + $0x60] sm:$0xf] %v978_v19  ;;  %v1115_v7 = vrot.slane %v1113_v15, 6  ;;  %v774_v29 = vrot.slane %v742_v10, 7  ;;  %3674 = vmatprep.subr.bf16.mxu0 %v4298_v0  ;;  %v777_v33 = vrot.slane %v4735_v16, 7 }
  0xca   : > { %v3949_v31 = vld [vmem:[#allocation2 + $0x1c] ss:$36 sps:$4 sm:$0xff]   ;;  %v1106_v32 = vor.u32 %v1105_v21, %v1102_v20  ;;  %v867_v40 = vrot.slane %v4724_v63, 4  ;;  %v869_v41 = vshrl.u32 %v811_v17, 16  ;;  %v872_v47 = vshll.u32 %v811_v17, 16  ;;  %v3968_v2 = vld [vmem:[#allocation6 + $0x220] sm:$0xff]  }
  0xcb   : > { %v988_v9 = vsel %vm4549_vm8, %v983_v27, %v4726_v3  ;;  %v4751_v23 = vor.u32 %v1115_v7, %v1112_v28  ;;  %v775_v35 = vsel %vm4629_vm11, %v773_v22, %v774_v29  ;;  %v776_v36 = vrot.slane %v774_v29, 4  ;;  %2346 = vmatprep.mubr.bf16.mxu1 %v3949_v31  ;;  %v1062_v50 = vld [vmem:[%s4512_s18 + $0x44] sm:$0xf]  ;;  %v1063_v1 = vld [vmem:[%s4512_s18 + $0x48] sm:$0xf] }
  0xcc   : > { %1051 = vst [vmem:[#allocation2 + $0x84] sm:$0xf] %v988_v9  ;;  %v1107_v38 = vsel %vm4695_vm1, %v1098_v6, %v1106_v32  ;;  %v1108_v39 = vrot.slane %v1106_v32, 4  ;;  %801 = vst [vmem:[#allocation2 + $0xa0] sm:$0xf] %v775_v35  ;;  %2347 = vmatmul.mubr.bf16.vlgmr.msra.gmra.mrb[20].mxu1 %v3947_v30  ;;  %v1273_v45 = vld [vmem:[#allocation2 + $0x58] sm:$0xff]  ;;  %3675 = vmatpush3.bf16.msra.mxu0 %v3959_v11 }
  0xcd   : > { %1179 = vst [vmem:[#allocation2 + $0x64] sm:$0xf] %v1107_v38  ;;  %v778_v46 = vsel %vm4629_vm11, %v776_v36, %v777_v33  ;;  %v879_v48 = vshrl.u32 %v812_v24, 16  ;;  %v882_v49 = vshll.u32 %v812_v24, 16  ;;  %3707 = vmatpush3.bf16.msra.mxu1 %v3951_v18  ;;  %v871_v54 = vrot.slane %v869_v41, 6  ;;  %3676 = vmatprep.subr.bf16.mxu0 %v4298_v0  ;;  %v3960_v6 = vld [vmem:[%s5344_s2 + $0x10] sm:$0xff]  }
  0xce   : > { %v1117_v52 = vsel %vm4695_vm1, %v1108_v39, %v4751_v23  ;;  %802 = vst [vmem:[#allocation2 + $0xc4] sm:$0xf] %v778_v46  ;;  %v991_v55 = vrot.slane %v989_v61, 4  ;;  %v995_v57 = vshll.u32 %v940_v37, 16  ;;  %3708 = vmatprep.subr.bf16.mxu1 %v4298_v0  ;;  %v874_v60 = vrot.slane %v872_v47, 7  ;;  %v3967_v11 = vld [vmem:[%s5344_s2 + $0x18] sm:$0xff]  }
  0xcf   : > { %v1278_v58 = vld [vmem:[#allocation2 + $0x7c] sm:$0xff]  ;;  %1180 = vst [vmem:[#allocation2 + $0x88] sm:$0xf] %v1117_v52  ;;  %v881_v56 = vrot.slane %v879_v48, 6  ;;  %v884_v63 = vrot.slane %v882_v49, 7  ;;  %v999_v59 = vshrl.u32 %v940_v37, 16 }
  0xd0   : > { %v3953_v62 = vld [vmem:[#allocation2 + $0x5c] ss:$36 sps:$4 sm:$0xff]   ;;  %v3253_v4 = vcombine.low %v1273_v45, %v1278_v58  ;;  %v992_v34 = vor.u32 %v991_v55, %v4726_v3  ;;  %v997_v61 = vrot.slane %v995_v57, 5  ;;  %v875_v8 = vor.u32 %v874_v60, %v871_v54  ;;  %3677 = vmatpush3.bf16.msra.mxu0 %v3966_v44  ;;  %v744_v22 = vld [vmem:[%s4512_s18 + $0xa0] sm:$0xf]  ;;  %v1253_v52 = vld [vmem:[%s5345_s3 + $0x8] sm:$0xff] }
  0xd1   : > { %2282 = vmatprep.mubr.bf16.mxu0 %v3953_v62  ;;  %v4782_v10 = vor.u32 %v884_v63, %v881_v56  ;;  %v1005_v12 = vshll.u32 %v4760_v43, 16  ;;  %v1009_v13 = vshrl.u32 %v4760_v43, 16  ;;  %3709 = vmatpush3.bf16.msra.mxu1 %v3958_v53  ;;  %v1001_v15 = vrot.slane %v999_v59, 4  ;;  %v4800_v29 = vld [vmem:[%s4512_s18 + $0xa4] sm:$0xf]  ;;  %v1252_v30 = vld [vmem:[%s5345_s3] sm:$0xff] }
  0xd2   : > { %2283 = vmatmul.mubr.bf16.gmra.mrb[24].mxu0 %v3253_v4  ;;  %v993_v14 = vrot.slane %v992_v34, 4  ;;  %v1118_v17 = vrot.slane %v4751_v23, 4  ;;  %v1120_v3 = vshrl.u32 %v1062_v50, 16  ;;  %3710 = vmatprep.subr.bf16.mxu1 %v4298_v0  ;;  %v876_v18 = vsel %vm4663_vm0, %v867_v40, %v875_v8  ;;  %v813_v35 = vld [vmem:[%s4512_s18 + $0x74] sm:$0xf]  ;;  %v3973_v58 = vld [vmem:[%s5344_s2 + $0x20] sm:$0xff]  }
  0xd3   : > { %v877_v19 = vrot.slane %v875_v8, 4  ;;  %v4790_v20 = vrot.slane %v1005_v12, 5  ;;  %v1123_v21 = vshll.u32 %v1062_v50, 16  ;;  %3678 = vmatprep.subr.bf16.mxu0 %v4298_v0  ;;  %930 = vst [vmem:[#allocation2 + $0xa4] sm:$0xf] %v876_v18  ;;  %v1002_v27 = vor.u32 %v1001_v15, %v997_v61  ;;  %v3975_v36 = vld [vmem:[#allocation6 + $0x228] sm:$0xff]   ;;  %2506 = vperm.xlu0 %3853, %v1252_v30  }
  0xd4   : > { %v998_v24 = vsel %vm4549_vm8, %v993_v14, %v997_v61  ;;  %v1122_v28 = vrot.slane %v1120_v3, 5  ;;  %v1130_v7 = vshrl.u32 %v1063_v1, 16  ;;  %v1133_v9 = vshll.u32 %v1063_v1, 16  ;;  %3679 = vmatpush3.bf16.msra.mxu0 %v3968_v2  ;;  %v3957_v38 = vld [vmem:[#allocation2 + $0x60] ss:$36 sps:$4 sm:$0xff]   ;;  %v1255_v60 = vld [vmem:[%s5345_s3 + $0x18] sm:$0xff] }
  0xd5   : > { %v886_v31 = vsel %vm4663_vm0, %v877_v19, %v4782_v10  ;;  %1052 = vst [vmem:[#allocation2 + $0xa8] sm:$0xf] %v998_v24  ;;  %v1125_v32 = vrot.slane %v1123_v21, 6  ;;  %v779_v23 = vrot.slane %v777_v33, 4  ;;  %3711 = vmatpush3.bf16.msra.mxu1 %v3960_v6  ;;  %v1003_v39 = vrot.slane %v1002_v27, 4  ;;  %3680 = vmatprep.subr.bf16.mxu0 %v4298_v0  ;;  %v1254_v33 = vld [vmem:[%s5345_s3 + $0x10] sm:$0xff] }
  0xd6   : > { %v3955_v37 = vld [vmem:[#allocation2 + $0x64] ss:$36 sps:$4 sm:$0xff]   ;;  %931 = vst [vmem:[#allocation2 + $0xc8] sm:$0xf] %v886_v31  ;;  %v1132_v41 = vrot.slane %v1130_v7, 5  ;;  %v1135_v44 = vrot.slane %v1133_v9, 6  ;;  %3712 = vmatprep.subr.bf16.mxu1 %v4298_v0  ;;  %2516 = vperm.xlu1 %3854, %v1254_v33  }
  0xd7   : > { %v1126_v40 = vor.u32 %v1125_v32, %v1122_v28  ;;  %v780_v45 = vrot.slane %v744_v22, 7  ;;  %v814_v16 = vld [vmem:[%s4512_s18 + $0x78] sm:$0xf]  ;;  %2354 = vmatprep.mubr.bf16.mxu1 %v3955_v37  ;;  %v1008_v46 = vsel %vm4549_vm8, %v1003_v39, %v4790_v20  ;;  %v783_v47 = vrot.slane %v4800_v29, 7  ;;  %v942_v50 = vld [vmem:[%s4512_s18 + $0x20] sm:$0xf]  ;;  %2511 = vperm.xlu0 %3853, %v1253_v52  }
  0xd8   : > { %v887_v48 = vrot.slane %v4782_v10, 4  ;;  %v889_v49 = vshrl.u32 %v813_v35, 16  ;;  %2355 = vmatmul.mubr.bf16.gmra.mrb[24].mxu1 %v3957_v38  ;;  %1053 = vst [vmem:[#allocation2 + $0xcc] sm:$0xf] %v1008_v46  ;;  %v4828_v55 = vor.u32 %v1135_v44, %v1132_v41  ;;  %3681 = vmatpush3.bf16.msra.mxu0 %v3975_v36  ;;  %v3979_v62 = vld [vmem:[#allocation6 + $0x230] sm:$0xff]   ;;  %v892_v1 = vshll.u32 %v813_v35, 16 }
  0xd9   : > { %v1127_v53 = vsel %vm4695_vm1, %v1118_v17, %v1126_v40  ;;  %v1128_v54 = vrot.slane %v1126_v40, 4  ;;  %v781_v57 = vsel %vm4629_vm11, %v779_v23, %v780_v45  ;;  %3713 = vmatpush3.bf16.msra.mxu1 %v3967_v11  ;;  %v782_v56 = vrot.slane %v780_v45, 4  ;;  %v4839_v4 = vld [vmem:[%s4512_s18 + $0x24] sm:$0xf]  ;;  %3682 = vmatprep.subr.bf16.mxu0 %v4298_v0  ;;  %v1064_v12 = vld [vmem:[%s4512_s18 + $0x4c] sm:$0xf] }
  0xda   : > { %1181 = vst [vmem:[#allocation2 + $0xac] sm:$0xf] %v1127_v53  ;;  %803 = vst [vmem:[#allocation2 + $0xe8] sm:$0xf] %v781_v57  ;;  %v891_v63 = vrot.slane %v889_v49, 6  ;;  %v899_v2 = vshrl.u32 %v814_v16, 16  ;;  %3714 = vmatprep.subr.bf16.mxu1 %v4298_v0  ;;  %2521 = vperm.xlu1 %3854, %v1255_v60  }
  0xdb   : > { %v1283_v6 = vld [vmem:[#allocation2 + $0xa0] sm:$0xff]  ;;  %v1137_v34 = vsel %vm4695_vm1, %v1128_v54, %v4828_v55  ;;  %v902_v61 = vshll.u32 %v814_v16, 16  ;;  %v1011_v59 = vrot.slane %v1009_v13, 4  ;;  %v1015_v8 = vshll.u32 %v942_v50, 16  ;;  %v1065_v19 = vld [vmem:[%s4512_s18 + $0x50] sm:$0xf] }
  0xdc   : > { %v3983_v14 = vld [vmem:[#allocation6 + $0x238] sm:$0xff]   ;;  %1182 = vst [vmem:[#allocation2 + $0xd0] sm:$0xf] %v1137_v34  ;;  %v784_v15 = vsel %vm4629_vm11, %v782_v56, %v783_v47  ;;  %v894_v17 = vrot.slane %v892_v1, 7  ;;  %v901_v3 = vrot.slane %v899_v2, 6  ;;  %v1019_v18 = vshrl.u32 %v942_v50, 16  ;;  %3683 = vmatpush3.bf16.msra.mxu0 %v3979_v62 }
  0xdd   : > { %v3976_v21 = vld [vmem:[%s5344_s2 + $0x28] sm:$0xff]   ;;  %v1256_v43 = vld [vmem:[%s5345_s3 + $0x20] sm:$0xff]  ;;  %804 = vst [vmem:[#allocation2 + $0x10c] sm:$0xf] %v784_v15  ;;  %v904_v24 = vrot.slane %v902_v61, 7  ;;  %v1012_v27 = vor.u32 %v1011_v59, %v4790_v20  ;;  %v1017_v28 = vrot.slane %v1015_v8, 5  ;;  %3715 = vmatpush3.bf16.msra.mxu1 %v3973_v58  ;;  %3684 = vmatprep.subr.bf16.mxu0 %v4298_v0 }
  0xde   : > { %v1288_v13 = vld [vmem:[#allocation2 + $0xc4] sm:$0xff]  ;;  %v1025_v7 = vshll.u32 %v4839_v4, 16  ;;  %v895_v30 = vor.u32 %v894_v17, %v891_v63  ;;  %v1021_v31 = vrot.slane %v1019_v18, 4  ;;  %v1029_v32 = vshrl.u32 %v4839_v4, 16  ;;  %3716 = vmatprep.subr.bf16.mxu1 %v4298_v0  ;;  %v1258_v36 = vld [vmem:[%s5345_s3 + $0x30] sm:$0xff]  ;;  %2526 = vperm.xlu0 %3853, %v1256_v43   ;;  %v3984_v18 = vld [vmem:[%s5344_s2 + $0x38] sm:$0xff]  }
  0xdf   : > { %v3961_v22 = vld [vmem:[#allocation2 + $0xa4] ss:$36 sps:$4 sm:$0xff]   ;;  %v3262_v11 = vcombine.low %v1283_v6, %v1288_v13  ;;  %v4864_v9 = vor.u32 %v904_v24, %v901_v3  ;;  %v1013_v23 = vrot.slane %v1012_v27, 4  ;;  %v1138_v20 = vrot.slane %v4828_v55, 4  ;;  %v746_v44 = vld [vmem:[%s4512_s18 + $0xa8] sm:$0x7] }
  0xe0   : > { %2290 = vmatprep.mubr.bf16.mxu0 %v3961_v22  ;;  %v4866_v35 = vrot.slane %v1025_v7, 5  ;;  %v1257_v37 = vld [vmem:[%s5345_s3 + $0x28] sm:$0xff]  ;;  %v896_v38 = vsel %vm4663_vm0, %v887_v48, %v895_v30  ;;  %v897_v39 = vrot.slane %v895_v30, 4  ;;  %v1022_v40 = vor.u32 %v1021_v31, %v1017_v28  ;;  %v815_v49 = vld [vmem:[%s4512_s18 + $0x7c] sm:$0x7]  ;;  %3685 = vmatpush3.bf16.msra.mxu0 %v3983_v14 }
  0xe1   : > { %2291 = vmatmul.mubr.bf16.gmra.mrb[28].mxu0 %v3262_v11  ;;  %v1140_v41 = vshrl.u32 %v1064_v12, 16  ;;  %932 = vst [vmem:[#allocation2 + $0xec] sm:$0xf] %v896_v38  ;;  %v1018_v45 = vsel %vm4549_vm8, %v1013_v23, %v1017_v28  ;;  %v1143_v16 = vshll.u32 %v1064_v12, 16  ;;  %v1150_v33 = vshrl.u32 %v1065_v19, 16  ;;  %2531 = vperm.xlu1 %3854, %v1257_v37   ;;  %v3982_v54 = vld [vmem:[%s5344_s2 + $0x30] sm:$0xff]  }
  0xe2   : > { %v1153_v46 = vshll.u32 %v1065_v19, 16  ;;  %v906_v10 = vsel %vm4663_vm0, %v897_v39, %v4864_v9  ;;  %v1023_v48 = vrot.slane %v1022_v40, 4  ;;  %1054 = vst [vmem:[#allocation2 + $0xf0] sm:$0xf] %v1018_v45  ;;  %3717 = vmatpush3.bf16.msra.mxu1 %v3976_v21  ;;  %v785_v52 = vrot.slane %v783_v47, 4  ;;  %2536 = vperm.xlu0 %3853, %v1258_v36   ;;  %v1259_v47 = vld [vmem:[%s5345_s3 + $0x38] sm:$0xff] }
  0xe3   : > { %v1142_v50 = vrot.slane %v1140_v41, 5  ;;  %v944_v53 = vld [vmem:[%s4512_s18 + $0x28] sm:$0x1]  ;;  %933 = vst [vmem:[#allocation2 + $0x110] sm:$0xf] %v906_v10  ;;  %v1145_v58 = vrot.slane %v1143_v16, 6  ;;  %3718 = vmatprep.subr.bf16.mxu1 %v4298_v0 }
  0xe4   : > { %v3963_v55 = vld [vmem:[#allocation2 + $0xac] ss:$36 sps:$4 sm:$0xff]   ;;  %v1028_v62 = vsel %vm4549_vm8, %v1023_v48, %v4866_v35  ;;  %v1152_v60 = vrot.slane %v1150_v33, 5  ;;  %v1155_v56 = vrot.slane %v1153_v46, 6  ;;  %v786_v63 = vrot.slane %v746_v44, 7  ;;  %v1260_v34 = vld [vmem:[%s5345_s3 + $0x40] sm:$0xff] }
  0xe5   : > { %v3965_v57 = vld [vmem:[#allocation2 + $0xa8] ss:$36 sps:$4 sm:$0xff]   ;;  %2362 = vmatprep.mubr.bf16.mxu1 %v3963_v55  ;;  %1055 = vst [vmem:[#allocation2 + $0x114] sm:$0xf] %v1028_v62  ;;  %v1146_v1 = vor.u32 %v1145_v58, %v1142_v50  ;;  %v907_v2 = vrot.slane %v4864_v9, 4  ;;  %v909_v4 = vshrl.u32 %v815_v49, 16  ;;  %2541 = vperm.xlu1 %3854, %v1259_v47  }
  0xe6   : > { %v1066_v29 = vld [vmem:[%s4512_s18 + $0x54] sm:$0x3]  ;;  %v912_v6 = vshll.u32 %v815_v49, 16  ;;  %2363 = vmatmul.mubr.bf16.gmra.mrb[28].mxu1 %v3965_v57  ;;  %v1156_v61 = vor.u32 %v1155_v56, %v1152_v60  ;;  %v787_v59 = vsel %vm4629_vm11, %v785_v52, %v786_v63  ;;  %v1031_v8 = vrot.slane %v1029_v32, 4  ;;  %2546 = vperm.xlu0 %3853, %v1260_v34   ;;  %v1186_v23 = vld [vmem:[%s4512_s18 + $0x4] sm:$0xe] }
  0xe7   : > { %v1035_v12 = vshll.u32 %v944_v53, 16  ;;  %v1147_v14 = vsel %vm4695_vm1, %v1138_v20, %v1146_v1  ;;  %v1148_v15 = vrot.slane %v1146_v1, 4  ;;  %805 = vst [vmem:[#allocation2 + $0x130] sm:$0xf] %v787_v59  ;;  %v911_v17 = vrot.slane %v909_v4, 6  ;;  %3719 = vmatpush3.bf16.msra.mxu1 %v3982_v54 }
  0xe8   : > { %v914_v3 = vrot.slane %v912_v6, 7  ;;  %v1293_v19 = vld [vmem:[#allocation2 + $0xe8] sm:$0xff]  ;;  %1183 = vst [vmem:[#allocation2 + $0xf4] sm:$0xf] %v1147_v14  ;;  %v1032_v21 = vor.u32 %v1031_v8, %v4866_v35  ;;  %v1160_v43 = vshrl.u32 %v1066_v29, 16  ;;  %3720 = vmatprep.subr.bf16.mxu1 %v4298_v0  ;;  %v1163_v24 = vshll.u32 %v1066_v29, 16 }
  0xe9   : > { %v1037_v51 = vrot.slane %v1035_v12, 5  ;;  %v1157_v13 = vsel %vm4695_vm1, %v1148_v15, %v1156_v61  ;;  %v1158_v32 = vrot.slane %v1156_v61, 4  ;;  %v1187_v20 = vld [vmem:[%s4512_s18 + $0x8] sm:$0xf]  ;;  %v1188_v36 = vld [vmem:[%s4512_s18 + $0xc] sm:$0xf] }
  0xea   : > { %v915_v22 = vor.u32 %v914_v3, %v911_v17  ;;  %v1298_v27 = vld [vmem:[#allocation2 + $0x10c] sm:$0xff]  ;;  %1184 = vst [vmem:[#allocation2 + $0x118] sm:$0xf] %v1157_v13  ;;  %v1033_v7 = vrot.slane %v1032_v21, 4  ;;  %v1162_v11 = vrot.slane %v1160_v43, 5  ;;  %v1165_v9 = vrot.slane %v1163_v24, 6 }
  0xeb   : > { %v3969_v28 = vld [vmem:[#allocation2 + $0xec] ss:$36 sps:$4 sm:$0xff]   ;;  %v3271_v30 = vcombine.low %v1293_v19, %v1298_v27  ;;  %3721 = vmatpush3.bf16.msra.mxu1 %v3984_v18  ;;  %v3239_v37 = vrot.slane %v1186_v23, 9  ;;  %v1208_v39 = vrot.slane %v1187_v20, 5  ;;  %v1211_v42 = vrot.slane %v1188_v36, 5 }
  0xec   : > { %v916_v31 = vsel %vm4663_vm0, %v907_v2, %v915_v22  ;;  %2298 = vmatprep.mubr.bf16.mxu0 %v3969_v28  ;;  %v1038_v35 = vsel %vm4549_vm8, %v1033_v7, %v1037_v51  ;;  %v1166_v38 = vor.u32 %v1165_v9, %v1162_v11  ;;  %v1189_v40 = vld [vmem:[%s4512_s18 + $0x10] sm:$0xf]  ;;  %v1190_v41 = vld [vmem:[%s4512_s18 + $0x14] sm:$0xf]  ;;  %v1191_v52 = vld [vmem:[%s4512_s18 + $0x18] sm:$0xf] }
  0xed   : > { %934 = vst [vmem:[#allocation2 + $0x134] sm:$0xf] %v916_v31  ;;  %2299 = vmatmul.mubr.bf16.gmra.mrb[32].mxu0 %v3271_v30  ;;  %1056 = vst [vmem:[#allocation2 + $0x138] sm:$0xf] %v1038_v35  ;;  %v1209_v45 = vsel %vm4522_vm2, %v3239_v37, %v1208_v39  ;;  %v1210_v5 = vrot.slane %v1208_v39, 4  ;;  %v1213_v16 = vrot.slane %v1211_v42, 4 }
  0xee   : > { %v1167_v44 = vsel %vm4695_vm1, %v1158_v32, %v1166_v38  ;;  %1243 = vst [vmem:[#allocation2 + $0x20] sm:$0xf] %v1209_v45  ;;  %v1214_v33 = vrot.slane %v1189_v40, 5  ;;  %v1217_v46 = vrot.slane %v1190_v41, 5  ;;  %v3974_v10 = vld [vmem:[#allocation2 + $0xf0] ss:$36 sps:$4 sm:$0xff]  }
  0xef   : > { %1185 = vst [vmem:[#allocation2 + $0x13c] sm:$0xf] %v1167_v44  ;;  %v1212_v48 = vsel %vm4522_vm2, %v1210_v5, %v1211_v42  ;;  %v1192_v53 = vld [vmem:[%s4512_s18 + $0x1c] sm:$0xf]  ;;  %v1220_v57 = vrot.slane %v1191_v52, 5 }
  0xf0   : > { %1244 = vst [vmem:[#allocation2 + $0x44] sm:$0xf] %v1212_v48  ;;  %v1215_v25 = vsel %vm4522_vm2, %v1213_v16, %v1214_v33  ;;  %v1216_v50 = vrot.slane %v1214_v33, 4  ;;  %v1219_v54 = vrot.slane %v1217_v46, 4  ;;  %v1223_v58 = vrot.slane %v1192_v53, 5 }
  0xf1   : > { %v3971_v49 = vld [vmem:[#allocation2 + $0xf4] ss:$36 sps:$4 sm:$0xff]   ;;  %1245 = vst [vmem:[#allocation2 + $0x68] sm:$0xf] %v1215_v25  ;;  %v1222_v47 = vrot.slane %v1220_v57, 4 }
  0xf2   : > { %2370 = vmatprep.mubr.bf16.mxu1 %v3971_v49  ;;  %v1218_v56 = vsel %vm4522_vm2, %v1216_v50, %v1217_v46  ;;  %v1193_v63 = vld [vmem:[%s4512_s18 + $0x20] sm:$0xf]  ;;  %v1221_v29 = vsel %vm4522_vm2, %v1219_v54, %v1220_v57  ;;  %v1194_v1 = vld [vmem:[%s4512_s18 + $0x24] sm:$0xf]  ;;  %v1225_v2 = vrot.slane %v1223_v58, 4 }
  0xf3   : > { %2371 = vmatmul.mubr.bf16.gmra.mrb[32].mxu1 %v3974_v10  ;;  %1246 = vst [vmem:[#allocation2 + $0x8c] sm:$0xf] %v1218_v56  ;;  %v1226_v4 = vrot.slane %v1193_v63, 5  ;;  %1247 = vst [vmem:[#allocation2 + $0xb0] sm:$0xf] %v1221_v29  ;;  %v1229_v6 = vrot.slane %v1194_v1, 5  ;;  %v1224_v61 = vsel %vm4522_vm2, %v1222_v47, %v1223_v58 }
  0xf4   : > { %v1303_v55 = vld [vmem:[#allocation2 + $0x130] sm:$0xff]  ;;  %1248 = vst [vmem:[#allocation2 + $0xd4] sm:$0xf] %v1224_v61  ;;  %v1195_v15 = vld [vmem:[%s4512_s18 + $0x28] sm:$0x1]  ;;  %s3745_s18 = smul.u32 36, %s4508_s26 }
  0xf5   : > { %v3281_v62 = vcombine.high %v1303_v55, %v1303_v55  ;;  %v3280_v60 = vcombine.low %v1303_v55, %v1303_v55  ;;  %v1227_v59 = vsel %vm4522_vm2, %v1225_v2, %v1226_v4  ;;  %v1228_v8 = vrot.slane %v1226_v4, 4  ;;  %v3986_v51 = vld [vmem:[#allocation2 + $0x10] ss:$36 sps:$4 sm:$0xff]   ;;  %v3988_v13 = vld [vmem:[#allocation2 + $0x58] ss:$36 sps:$4 sm:$0xff]  }
  0xf6   : > { %v1304_v34 = vld [vmem:[#allocation2 + $0x138] sm:$0xff]  ;;  %1249 = vst [vmem:[#allocation2 + $0xf8] sm:$0xf] %v1227_v59  ;;  %v1231_v17 = vrot.slane %v1229_v6, 4  ;;  %v1232_v18 = vrot.slane %v1195_v15, 5  ;;  %s5012_s17 = scalar_lea.vmem [#allocation8], %s3745_s18 }
  0xf7   : > { %2306 = vmatprep.mubr.bf16.mxu0 %v3281_v62  ;;  %v3283_v12 = vcombine.high %v1304_v34, %v1304_v34  ;;  %v3282_v14 = vcombine.low %v1304_v34, %v1304_v34  ;;  %v1230_v3 = vsel %vm4522_vm2, %v1228_v8, %v1229_v6  ;;  %v3985_v19 = vld [vmem:[#allocation2 + $0x20] ss:$36 sps:$4 sm:$0xff]   ;;  %v3992_v27 = vld [vmem:[#allocation2 + $0xe8] ss:$36 sps:$4 sm:$0xff]   ;;  %v3994_v7 = vld [vmem:[#allocation2 + $0x130] ss:$0 sps:$4 sm:$0xff]  }
  0xf8   : > { %2307 = vmatmul.mubr.bf16.gmra.mrb[36].mxu0 %v3280_v60  ;;  %1250 = vst [vmem:[#allocation2 + $0x11c] sm:$0xf] %v1230_v3  ;;  %v1233_v21 = vsel %vm4522_vm2, %v1231_v17, %v1232_v18  ;;  %v3990_v22 = vld [vmem:[#allocation2 + $0xa0] ss:$36 sps:$4 sm:$0xff]   ;;  %s5016_s19 = scalar_lea.vmem [#allocation12], %s3745_s18  ;;  %s2900_s24 = sshll.u32 %s5012_s17, 4  ;;  %s5031_s24 = int_to_ptr.vmem [resolvable:$true] %s2900_s24 }
  0xf9   : > { %3686 = vmatprep.mubr.msk.bf16.mxu0 %vm4299_vm3, %v4298_v0  ;;  %2378 = vmatprep.mubr.bf16.mxu1 %v3283_v12  ;;  %1251 = vst [vmem:[#allocation2 + $0x140] sm:$0xf] %v1233_v21  ;;  %s2945_s27 = sshll.u32 %s5016_s19, 4  ;;  %s5054_s18 = scalar_lea.hbm %s5296_s7, %s3746_s25  ;;  %s5044_s27 = int_to_ptr.vmem [resolvable:$true] %s2945_s27 }
  0xfa   : > { %v3987_v43 = vld [vmem:[#allocation2 + $0x68] ss:$36 sps:$4 sm:$0xff]   ;;  %s4053_s20 = scalar_lea.vmem %s5031_s24, 576 }
  0xfb   : > { %2379 = vmatmul.mubr.bf16.gmra.mrb[36].mxu1 %v3282_v14  ;;  %v3989_v26 = vld [vmem:[#allocation2 + $0xb0] ss:$36 sps:$4 sm:$0xff]   ;;  %p4054_p6 = scmp.ne.s32.totalorder %s5031_s24, %s4053_s20 }
  0xfc   : > { %3722 = vmatprep.mubr.msk.bf16.mxu1 %vm4299_vm3, %v4298_v0 }
  0xfd   : > { %p4055_p8 = pnand %p4054_p6, %p4451_p10 }
  0xff   : > { %v3991_v24 = vld [vmem:[#allocation2 + $0xf8] ss:$36 sps:$4 sm:$0xff]   ;;  %p4056_p12 = pneg %p4055_p8 }
 0x100   : > { %3687 = vmatmul.mubr.bf16.vlgmr.msra.gmra.mrb[40].mxu0 %v3985_v19  ;;  %v3993_v28 = vld [vmem:[#allocation2 + $0x140] ss:$0 sps:$4 sm:$0xff]  }
 0x101   : > { %3690 = vmatprep.mubr.msk.bf16.mxu0 %vm4299_vm3, %v4298_v0 }
 0x103   : > { %3723 = vmatmul.mubr.bf16.vlgmr.msra.gmra.mrb[40].mxu1 %v3986_v51 }
 0x104   : > { %3726 = vmatprep.mubr.msk.bf16.mxu1 %vm4299_vm3, %v4298_v0 }
 0x108   : > { %3691 = vmatmul.mubr.bf16.gmra.mrb[44].mxu0 %v3987_v43 }
 0x109   : > { %3694 = vmatprep.mubr.msk.bf16.mxu0 %vm4299_vm3, %v4298_v0 }
 0x10b   : > { %3727 = vmatmul.mubr.bf16.gmra.mrb[44].mxu1 %v3988_v13 }
 0x10c   : > { %3730 = vmatprep.mubr.msk.bf16.mxu1 %vm4299_vm3, %v4298_v0 }
 0x110   : > { %3695 = vmatmul.mubr.bf16.gmra.mrb[48].mxu0 %v3989_v26 }
 0x111   : > { %3698 = vmatprep.mubr.msk.bf16.mxu0 %vm4299_vm3, %v4298_v0 }
 0x113   : > { %3731 = vmatmul.mubr.bf16.gmra.mrb[48].mxu1 %v3990_v22 }
 0x114   : > { %3734 = vmatprep.mubr.msk.bf16.mxu1 %vm4299_vm3, %v4298_v0 }
 0x118   : > { %3699 = vmatmul.mubr.bf16.gmra.mrb[52].mxu0 %v3991_v24 }
 0x119   : > { %3702 = vmatprep.mubr.msk.bf16.mxu0 %vm4299_vm3, %v4298_v0 }
 0x11b   : > { %3735 = vmatmul.mubr.bf16.gmra.mrb[52].mxu1 %v3992_v27 }
 0x11c   : > { %3738 = vmatprep.mubr.msk.bf16.mxu1 %vm4299_vm3, %v4298_v0 }
 0x120   : > { %3703 = vmatmul.mubr.bf16.gmra.mrb[56].mxu0 %v3993_v28 }
 0x123   : > { %3739 = vmatmul.mubr.bf16.gmra.mrb[56].mxu1 %v3994_v7 }
 0x162   : > { %v3476_v11 = vpop.f32.mrb[0].mxu0 }
 0x163   : > { %v3477_v30 = vpop.f32.mrb[1].mxu0  ;;  %v3522_v35 = vpop.f32.mrb[0].mxu1 }
 0x164   : > { %v3478_v31 = vadd.f32 %v3477_v30, %v3476_v11  ;;  %v3479_v32 = vpop.f32.mrb[2].mxu0  ;;  %v3523_v20 = vpop.f32.mrb[1].mxu1 }
 0x165   : > { %v3480_v9 = vpop.f32.mrb[3].mxu0  ;;  %v3524_v36 = vadd.f32 %v3523_v20, %v3522_v35  ;;  %v3525_v37 = vpop.f32.mrb[2].mxu1 }
 0x166   : > { %v3481_v23 = vadd.f32 %v3480_v9, %v3479_v32  ;;  %v3526_v38 = vpop.f32.mrb[3].mxu1 }
 0x167   : > { %v2205_v39 = vadd.f32 %v3524_v36, %v3478_v31  ;;  %v3527_v42 = vadd.f32 %v3526_v38, %v3525_v37 }
 0x169   : > { %v2208_v40 = vadd.f32 %v3527_v42, %v3481_v23 }
 0x16d   : > { %v3482_v41 = vpop.f32.mrb[4].mxu0 }
 0x16e   : > { %v3483_v44 = vpop.f32.mrb[5].mxu0 }
 0x16f   : > { %v3484_v0 = vadd.f32 %v3483_v44, %v3482_v41  ;;  %v3485_v45 = vpop.f32.mrb[6].mxu0  ;;  %v3528_v33 = vpop.f32.mrb[4].mxu1 }
 0x170   : > { %v3486_v5 = vpop.f32.mrb[7].mxu0  ;;  %v3529_v46 = vpop.f32.mrb[5].mxu1 }
 0x171   : > { %v3487_v16 = vadd.f32 %v3486_v5, %v3485_v45  ;;  %v3530_v49 = vadd.f32 %v3529_v46, %v3528_v33  ;;  %v3531_v10 = vpop.f32.mrb[6].mxu1 }
 0x172   : > { %v3532_v48 = vpop.f32.mrb[7].mxu1 }
 0x173   : > { %v4970_v25 = vadd.f32 %v3530_v49, %v3484_v0  ;;  %v3533_v50 = vadd.f32 %v3532_v48, %v3531_v10 }
 0x175   : > { %v4972_v52 = vadd.f32 %v3533_v50, %v3487_v16  ;;  %v3488_v53 = vpop.f32.mrb[8].mxu0 }
 0x176   : > { %v3489_v54 = vpop.f32.mrb[9].mxu0 }
 0x177   : > { %v3490_v55 = vadd.f32 %v3489_v54, %v3488_v53  ;;  %v3491_v57 = vpop.f32.mrb[10].mxu0  ;;  %v3534_v60 = vpop.f32.mrb[8].mxu1 }
 0x178   : > { %v3492_v58 = vpop.f32.mrb[11].mxu0  ;;  %v3535_v56 = vpop.f32.mrb[9].mxu1 }
 0x179   : > { %v3493_v62 = vadd.f32 %v3492_v58, %v3491_v57  ;;  %v3536_v63 = vadd.f32 %v3535_v56, %v3534_v60  ;;  %v3537_v29 = vpop.f32.mrb[10].mxu1 }
 0x17a   : > { %v3538_v47 = vpop.f32.mrb[11].mxu1 }
 0x17b   : > { %v4974_v1 = vadd.f32 %v3536_v63, %v3490_v55  ;;  %v3539_v2 = vadd.f32 %v3538_v47, %v3537_v29 }
 0x17d   : > { %v4976_v4 = vadd.f32 %v3539_v2, %v3493_v62 }
 0x17f   : > { %v3494_v6 = vpop.f32.mrb[12].mxu0 }
 0x180   : > { %v3495_v34 = vpop.f32.mrb[13].mxu0 }
 0x181   : > { %v3496_v61 = vadd.f32 %v3495_v34, %v3494_v6  ;;  %v3497_v59 = vpop.f32.mrb[14].mxu0 }
 0x182   : > { %v3498_v8 = vpop.f32.mrb[15].mxu0  ;;  %v3540_v14 = vpop.f32.mrb[12].mxu1 }
 0x183   : > { %v3499_v12 = vadd.f32 %v3498_v8, %v3497_v59  ;;  %v3541_v15 = vpop.f32.mrb[13].mxu1 }
 0x184   : > { %v3542_v17 = vadd.f32 %v3541_v15, %v3540_v14  ;;  %v3543_v3 = vpop.f32.mrb[14].mxu1 }
 0x185   : > { %v3544_v18 = vpop.f32.mrb[15].mxu1 }
 0x186   : > { %v4978_v19 = vadd.f32 %v3542_v17, %v3496_v61  ;;  %v3545_v21 = vadd.f32 %v3544_v18, %v3543_v3 }
 0x188   : > { %v3500_v51 = vpop.f32.mrb[16].mxu0  ;;  %v4980_v13 = vadd.f32 %v3545_v21, %v3499_v12 }
 0x189   : > { %v3501_v43 = vpop.f32.mrb[17].mxu0 }
 0x18a   : > { %v3502_v26 = vadd.f32 %v3501_v43, %v3500_v51  ;;  %v3503_v22 = vpop.f32.mrb[18].mxu0  ;;  %v3546_v27 = vpop.f32.mrb[16].mxu1 }
 0x18b   : > { %v3504_v24 = vpop.f32.mrb[19].mxu0  ;;  %v3547_v28 = vpop.f32.mrb[17].mxu1 }
 0x18c   : > { %v3548_v7 = vadd.f32 %v3547_v28, %v3546_v27  ;;  %v3549_v11 = vpop.f32.mrb[18].mxu1 }
 0x18d   : > { %v3550_v30 = vpop.f32.mrb[19].mxu1 }
 0x18e   : > { %v4982_v31 = vadd.f32 %v3548_v7, %v3502_v26 }
 0x196   : > { %v3568_v32 = vpop.f32.mrb[20].mxu0 }
 0x197   : > { %v3569_v9 = vpop.f32.mrb[21].mxu0 }
 0x198   : > { %v3570_v23 = vadd.f32 %v3569_v9, %v3568_v32  ;;  %v3571_v35 = vpop.f32.mrb[22].mxu0 }
 0x199   : > { %v3572_v20 = vpop.f32.mrb[23].mxu0 }
 0x19a   : > { %v2277_v36 = vadd.f32 %v3570_v23, %v2205_v39  ;;  %v3573_v37 = vadd.f32 %v3572_v20, %v3571_v35 }
 0x19c   : > { %v2280_v38 = vadd.f32 %v3573_v37, %v2208_v40 }
 0x19f   : > { %v3614_v42 = vpop.f32.mrb[20].mxu1 }
 0x1a0   : > { %v3615_v41 = vpop.f32.mrb[21].mxu1 }
 0x1a1   : > { %v3616_v44 = vadd.f32 %v3615_v41, %v3614_v42  ;;  %v3617_v0 = vpop.f32.mrb[22].mxu1  ;;  %v2507_v41 = vpop.permute.xlu0 %2506 }
 0x1a2   : > { %v3618_v45 = vpop.f32.mrb[23].mxu1 }
 0x1a3   : > { %v3619_v5 = vadd.f32 %v3618_v45, %v3617_v0  ;;  %v4984_v16 = vadd.f32 %v3616_v44, %v2277_v36 }
 0x1a5   : > { %v3574_v33 = vpop.f32.mrb[24].mxu0  ;;  %v4986_v49 = vadd.f32 %v3619_v5, %v2280_v38 }
 0x1a6   : > { %v3575_v46 = vpop.f32.mrb[25].mxu0 }
 0x1a7   : > { %v3576_v10 = vadd.f32 %v3575_v46, %v3574_v33  ;;  %v3577_v48 = vpop.f32.mrb[26].mxu0 }
 0x1a8   : > { %v3578_v50 = vpop.f32.mrb[27].mxu0 }
 0x1a9   : > { %v2285_v53 = vadd.f32 %v3576_v10, %v4970_v25  ;;  %v3579_v39 = vadd.f32 %v3578_v50, %v3577_v48 }
 0x1ab   : > { %v2288_v40 = vadd.f32 %v3579_v39, %v4972_v52  ;;  %v3620_v54 = vpop.f32.mrb[24].mxu1 }
 0x1ac   : > { %v3621_v55 = vpop.f32.mrb[25].mxu1 }
 0x1ad   : > { %v3622_v57 = vadd.f32 %v3621_v55, %v3620_v54  ;;  %v3623_v58 = vpop.f32.mrb[26].mxu1 }
 0x1ae   : > { %v3624_v62 = vpop.f32.mrb[27].mxu1 }
 0x1af   : > { %v3625_v60 = vadd.f32 %v3624_v62, %v3623_v58  ;;  %v4990_v56 = vadd.f32 %v3622_v57, %v2285_v53  ;;  %v2517_v62 = vpop.permute.xlu1 %2516 }
 0x1b1   : > { %v4992_v63 = vadd.f32 %v3625_v60, %v2288_v40  ;;  %v2512_v40 = vpop.permute.xlu0 %2511 }
 0x1b4   : > { %v3580_v29 = vpop.f32.mrb[28].mxu0 }
 0x1b5   : > { %v3581_v47 = vpop.f32.mrb[29].mxu0 }
 0x1b6   : > { %v3582_v2 = vadd.f32 %v3581_v47, %v3580_v29  ;;  %v3583_v6 = vpop.f32.mrb[30].mxu0 }
 0x1b7   : > { %v3584_v34 = vpop.f32.mrb[31].mxu0 }
 0x1b8   : > { %v2293_v25 = vadd.f32 %v3582_v2, %v4974_v1  ;;  %v3585_v61 = vadd.f32 %v3584_v34, %v3583_v6 }
 0x1b9   : > { %v3626_v59 = vpop.f32.mrb[28].mxu1 }
 0x1ba   : > { %v2296_v52 = vadd.f32 %v3585_v61, %v4976_v4  ;;  %v3627_v8 = vpop.f32.mrb[29].mxu1 }
 0x1bb   : > { %v3628_v12 = vadd.f32 %v3627_v8, %v3626_v59  ;;  %v3629_v14 = vpop.f32.mrb[30].mxu1 }
 0x1bc   : > { %v3630_v15 = vpop.f32.mrb[31].mxu1 }
 0x1bd   : > { %v3631_v17 = vadd.f32 %v3630_v15, %v3629_v14  ;;  %v4996_v3 = vadd.f32 %v3628_v12, %v2293_v25 }
 0x1bf   : > { %v4998_v18 = vadd.f32 %v3631_v17, %v2296_v52 }
 0x1c0   : > { %v3586_v21 = vpop.f32.mrb[32].mxu0 }
 0x1c1   : > { %v3587_v51 = vpop.f32.mrb[33].mxu0 }
 0x1c2   : > { %v3588_v43 = vadd.f32 %v3587_v51, %v3586_v21  ;;  %v3589_v26 = vpop.f32.mrb[34].mxu0 }
 0x1c3   : > { %v3590_v22 = vpop.f32.mrb[35].mxu0 }
 0x1c4   : > { %v2301_v1 = vadd.f32 %v3588_v43, %v4978_v19  ;;  %v3591_v24 = vadd.f32 %v3590_v22, %v3589_v26  ;;  %v2522_v43 = vpop.permute.xlu1 %2521 }
 0x1c6   : > { %v2304_v27 = vadd.f32 %v3591_v24, %v4980_v13  ;;  %v3632_v4 = vpop.f32.mrb[32].mxu1 }
 0x1c7   : > { %v3633_v28 = vpop.f32.mrb[33].mxu1 }
 0x1c8   : > { %v3634_v7 = vadd.f32 %v3633_v28, %v3632_v4  ;;  %v3635_v11 = vpop.f32.mrb[34].mxu1 }
 0x1c9   : > { %v3636_v30 = vpop.f32.mrb[35].mxu1 }
 0x1ca   : > { %v3637_v9 = vadd.f32 %v3636_v30, %v3635_v11  ;;  %v5002_v35 = vadd.f32 %v3634_v7, %v2301_v1 }
 0x1cb   : > { %v3592_v32 = vpop.f32.mrb[36].mxu0 }
 0x1cc   : > { %v3593_v23 = vpop.f32.mrb[37].mxu0  ;;  %v5004_v38 = vadd.f32 %v3637_v9, %v2304_v27 }
 0x1cd   : > { %v3594_v20 = vadd.f32 %v3593_v23, %v3592_v32  ;;  %v3595_v36 = vpop.f32.mrb[38].mxu0 }
 0x1ce   : > { %v3596_v37 = vpop.f32.mrb[39].mxu0  ;;  %v3638_v42 = vpop.f32.mrb[36].mxu1 }
 0x1cf   : > { %v2309_v19 = vadd.f32 %v3594_v20, %v4982_v31  ;;  %v3639_v13 = vpop.f32.mrb[37].mxu1 }
 0x1d0   : > { %v3640_v44 = vadd.f32 %v3639_v13, %v3638_v42  ;;  %v3641_v0 = vpop.f32.mrb[38].mxu1 }
 0x1d1   : > { %v3642_v45 = vpop.f32.mrb[39].mxu1 }
 0x1d2   : > { %v5008_v10 = vadd.f32 %v3640_v44, %v2309_v19 }
 0x1d3   : > { %v2420_v5 = vpop.f32.mrb[40].mxu0 }
 0x1d4   : > { %v2421_v33 = vadd.f32 %v2420_v5, %v4984_v16  ;;  %v3688_v46 = vpop.f32.mrb[41].mxu0 }
 0x1d5   : > { %v2423_v48 = vpop.f32.mrb[42].mxu0 }
 0x1d6   : > { %v2549_v50 = vmul.f32 %v2507_v41, %v2421_v33  ;;  %v2424_v53 = vadd.f32 %v2423_v48, %v4986_v49  ;;  %v3689_v39 = vpop.f32.mrb[43].mxu0  ;;  %v2732_v31 = vpop.f32.mrb[40].mxu1 }
 0x1d7   : > { %v2816_v57 = vmul.f32 %v2732_v31, %v2507_v41  ;;  %v3724_v58 = vpop.f32.mrb[41].mxu1  ;;  %v2527_v41 = vpop.permute.xlu0 %2526 }
 0x1d8   : > { %v3417_v54 = vpack.c.bf16 %v2424_v53, %v2421_v33  ;;  %v2550_v55 = vmul.f32 %v2512_v40, %v2424_v53  ;;  %v2573_v60 = vmul.f32 %v2549_v50, %v2421_v33  ;;  %v2735_v47 = vpop.f32.mrb[42].mxu1 }
 0x1d9   : > { %v3437_v2 = vpack.c.bf16 %v2735_v47, %v2732_v31  ;;  %v2817_v6 = vmul.f32 %v2735_v47, %v2512_v40  ;;  %v3725_v34 = vpop.f32.mrb[43].mxu1  ;;  %v2840_v52 = vmul.f32 %v2816_v57, %v2732_v31 }
 0x1da   : > { %3418 = vst [vmem:[%s5012_s17] sm:$0xff] %v3417_v54   ;;  %v2558_v16 = vadd.f32 %v2550_v55, %v2549_v50  ;;  %v2574_v29 = vmul.f32 %v2550_v55, %v2424_v53  ;;  %v2532_v50 = vpop.permute.xlu1 %2531 }
 0x1db   : > { %v2428_v49 = vpop.f32.mrb[44].mxu0  ;;  %3438 = vst [vmem:[%s5016_s19] sm:$0xff] %v3437_v2   ;;  %v2825_v8 = vadd.f32 %v2817_v6, %v2816_v57  ;;  %v2841_v12 = vmul.f32 %v2817_v6, %v2735_v47 }
 0x1dc   : > { %v2582_v25 = vadd.f32 %v2574_v29, %v2573_v60  ;;  %v2429_v61 = vadd.f32 %v2428_v49, %v4990_v56  ;;  %v3692_v59 = vpop.f32.mrb[45].mxu0 }
 0x1dd   : > { %v2431_v14 = vpop.f32.mrb[46].mxu0  ;;  %v2849_v51 = vadd.f32 %v2841_v12, %v2840_v52 }
 0x1de   : > { %v2551_v15 = vmul.f32 %v2517_v62, %v2429_v61  ;;  %v2432_v17 = vadd.f32 %v2431_v14, %v4992_v63  ;;  %v3693_v21 = vpop.f32.mrb[47].mxu0  ;;  %v2740_v1 = vpop.f32.mrb[44].mxu1 }
 0x1df   : > { %v2818_v27 = vmul.f32 %v2740_v1, %v2517_v62  ;;  %v3728_v4 = vpop.f32.mrb[45].mxu1 }
 0x1e0   : > { %v2559_v26 = vadd.f32 %v2558_v16, %v2551_v15  ;;  %v2575_v22 = vmul.f32 %v2551_v15, %v2429_v61  ;;  %v3422_v56 = vpack.c.bf16 %v2432_v17, %v2429_v61  ;;  %v2552_v24 = vmul.f32 %v2522_v43, %v2432_v17  ;;  %v2743_v30 = vpop.f32.mrb[46].mxu1  ;;  %v2537_v61 = vpop.permute.xlu0 %2536 }
 0x1e1   : > { %v2826_v32 = vadd.f32 %v2825_v8, %v2818_v27  ;;  %v2842_v9 = vmul.f32 %v2818_v27, %v2740_v1  ;;  %v3442_v23 = vpack.c.bf16 %v2743_v30, %v2740_v1  ;;  %v2819_v63 = vmul.f32 %v2743_v30, %v2522_v43  ;;  %v3729_v20 = vpop.f32.mrb[47].mxu1 }
 0x1e2   : > { %v2583_v28 = vadd.f32 %v2582_v25, %v2575_v22  ;;  %3454 = vst [vmem:[%s5012_s17 + $0x8] sm:$0xff] %v3422_v56   ;;  %v2560_v7 = vadd.f32 %v2559_v26, %v2552_v24  ;;  %v2576_v11 = vmul.f32 %v2552_v24, %v2432_v17 }
 0x1e3   : > { %v2436_v36 = vpop.f32.mrb[48].mxu0  ;;  %v2850_v13 = vadd.f32 %v2849_v51, %v2842_v9  ;;  %3457 = vst [vmem:[%s5016_s19 + $0x8] sm:$0xff] %v3442_v23   ;;  %v2827_v44 = vadd.f32 %v2826_v32, %v2819_v63  ;;  %v2843_v0 = vmul.f32 %v2819_v63, %v2743_v30  ;;  %v2542_v51 = vpop.permute.xlu1 %2541 }
 0x1e4   : > { %v2584_v37 = vadd.f32 %v2583_v28, %v2576_v11  ;;  %v2437_v19 = vadd.f32 %v2436_v36, %v4996_v3  ;;  %v3696_v42 = vpop.f32.mrb[49].mxu0 }
 0x1e5   : > { %v2439_v45 = vpop.f32.mrb[50].mxu0  ;;  %v2851_v48 = vadd.f32 %v2850_v13, %v2843_v0 }
 0x1e6   : > { %v2553_v5 = vmul.f32 %v2527_v41, %v2437_v19  ;;  %v2440_v33 = vadd.f32 %v2439_v45, %v4998_v18  ;;  %v3697_v46 = vpop.f32.mrb[51].mxu0  ;;  %v2748_v40 = vpop.f32.mrb[48].mxu1 }
 0x1e7   : > { %v2820_v3 = vmul.f32 %v2748_v40, %v2527_v41  ;;  %v3732_v55 = vpop.f32.mrb[49].mxu1 }
 0x1e8   : > { %v2561_v53 = vadd.f32 %v2560_v7, %v2553_v5  ;;  %v2577_v39 = vmul.f32 %v2553_v5, %v2437_v19  ;;  %v3427_v31 = vpack.c.bf16 %v2440_v33, %v2437_v19  ;;  %v2554_v54 = vmul.f32 %v2532_v50, %v2440_v33  ;;  %v2751_v60 = vpop.f32.mrb[50].mxu1 }
 0x1e9   : > { %v2828_v16 = vadd.f32 %v2827_v44, %v2820_v3  ;;  %v2844_v29 = vmul.f32 %v2820_v3, %v2748_v40  ;;  %v3447_v47 = vpack.c.bf16 %v2751_v60, %v2748_v40  ;;  %v2821_v18 = vmul.f32 %v2751_v60, %v2532_v50  ;;  %v3733_v2 = vpop.f32.mrb[51].mxu1 }
 0x1ea   : > { %v2585_v57 = vadd.f32 %v2584_v37, %v2577_v39  ;;  %3455 = vst [vmem:[%s5012_s17 + $0x10] sm:$0xff] %v3427_v31   ;;  %v2562_v58 = vadd.f32 %v2561_v53, %v2554_v54  ;;  %v2578_v62 = vmul.f32 %v2554_v54, %v2440_v33  ;;  %v2547_v37 = vpop.permute.xlu0 %2546 }
 0x1eb   : > { %v2444_v6 = vpop.f32.mrb[52].mxu0  ;;  %v2852_v59 = vadd.f32 %v2851_v48, %v2844_v29  ;;  %3458 = vst [vmem:[%s5016_s19 + $0x10] sm:$0xff] %v3447_v47   ;;  %v2829_v52 = vadd.f32 %v2828_v16, %v2821_v18  ;;  %v2845_v8 = vmul.f32 %v2821_v18, %v2751_v60 }
 0x1ec   : > { %v2586_v34 = vadd.f32 %v2585_v57, %v2578_v62  ;;  %v2445_v49 = vadd.f32 %v2444_v6, %v5002_v35  ;;  %v3700_v25 = vpop.f32.mrb[53].mxu0 }
 0x1ed   : > { %v2447_v12 = vpop.f32.mrb[54].mxu0  ;;  %v2853_v21 = vadd.f32 %v2852_v59, %v2845_v8 }
 0x1ee   : > { %v2555_v14 = vmul.f32 %v2537_v61, %v2445_v49  ;;  %v2448_v15 = vadd.f32 %v2447_v12, %v5004_v38  ;;  %v3701_v17 = vpop.f32.mrb[55].mxu0  ;;  %v2756_v22 = vpop.f32.mrb[52].mxu1 }
 0x1ef   : > { %v2822_v56 = vmul.f32 %v2756_v22, %v2537_v61  ;;  %v3736_v24 = vpop.f32.mrb[53].mxu1 }
 0x1f0   : > { %v2563_v43 = vadd.f32 %v2562_v58, %v2555_v14  ;;  %v2579_v26 = vmul.f32 %v2555_v14, %v2445_v49  ;;  %v3432_v35 = vpack.c.bf16 %v2448_v15, %v2445_v49  ;;  %v2556_v1 = vmul.f32 %v2542_v51, %v2448_v15  ;;  %v2759_v7 = vpop.f32.mrb[54].mxu1 }
 0x1f1   : > { %v2830_v38 = vadd.f32 %v2829_v52, %v2822_v56  ;;  %v2846_v11 = vmul.f32 %v2822_v56, %v2756_v22  ;;  %v3452_v30 = vpack.c.bf16 %v2759_v7, %v2756_v22  ;;  %v2823_v32 = vmul.f32 %v2759_v7, %v2542_v51  ;;  %v3737_v9 = vpop.f32.mrb[55].mxu1 }
 0x1f2   : > { %v2587_v27 = vadd.f32 %v2586_v34, %v2579_v26  ;;  %3456 = vst [vmem:[%s5012_s17 + $0x18] sm:$0xff] %v3432_v35   ;;  %v2564_v4 = vadd.f32 %v2563_v43, %v2556_v1  ;;  %v2580_v28 = vmul.f32 %v2556_v1, %v2448_v15 }
 0x1f3   : > { %v2452_v23 = vpop.f32.mrb[56].mxu0  ;;  %v2854_v19 = vadd.f32 %v2853_v21, %v2846_v11  ;;  %3459 = vst [vmem:[%s5016_s19 + $0x18] sm:$0xff] %v3452_v30   ;;  %v2831_v42 = vadd.f32 %v2830_v38, %v2823_v32  ;;  %v2847_v13 = vmul.f32 %v2823_v32, %v2759_v7 }
 0x1f4   : > { %v2588_v63 = vadd.f32 %v2587_v27, %v2580_v28  ;;  %v2453_v20 = vadd.f32 %v2452_v23, %v5008_v10  ;;  %v3704_v36 = vpop.f32.mrb[57].mxu0 }
 0x1f5   : > { %v2455_v41 = vpop.f32.mrb[58].mxu0  ;;  %v5046_v10 = vadd.f32 %v2854_v19, %v2847_v13 }
 0x1f6   : > { %v3404_v44 = vpack.c.bf16 %v2453_v20, %v2453_v20  ;;  %v2557_v0 = vmul.f32 %v2547_v37, %v2453_v20  ;;  %v3705_v45 = vpop.f32.mrb[59].mxu0  ;;  %v2764_v46 = vpop.f32.mrb[56].mxu1 }
 0x1f7   : > { %v3413_v48 = vpack.c.bf16 %v2764_v46, %v2764_v46  ;;  %v2824_v50 = vmul.f32 %v2764_v46, %v2547_v37  ;;  %v3740_v53 = vpop.f32.mrb[57].mxu1 }
 0x1f8   : > { %2503 = vst [vmem:[%s5012_s17 + $0x20] sm:$0xf] %v3404_v44  ;;  %v2565_v5 = vadd.f32 %v2564_v4, %v2557_v0  ;;  %v2581_v33 = vmul.f32 %v2557_v0, %v2453_v20  ;;  %s4300_s17 = smov [#allocation8]  }
 0x1f9   : > { %s4057_s21 = sshll.u32 %s4300_s17, 4  ;;  %s4058_s21 = int_to_ptr.vmem [resolvable:$false] %s4057_s21 }
 0x1fa   : > { %s4059_s0 = scalar_lea.vmem %s4058_s21, 1152  ;;  %p4060_p13 = scmp.lt.s32.totalorder %s5031_s24, %s4058_s21 }
 0x1fb   : > { %p4061_p0 = scmp.lt.s32.totalorder %s4059_s0, %s4053_s20 }
 0x1fd   : > { %p4062_p5 = por %p4061_p0, %p4060_p13 }
 0x1ff   : > { %p4063_p9 = pnand %p4062_p5, %p4056_p12 }
 0x201   : > { %4066 = shalt.err (!%p4063_p9)
}
 0x202   : > { %s4067_s25 = scalar_lea.hbm %s5042_s29, 576  ;;  %s4071_s17 = scalar_lea.hbm %s5346_s4, 1152 }
 0x203   : > { %p4068_p1 = scmp.ne.s32.totalorder %s5042_s29, %s4067_s25  ;;  %p4072_p7 = scmp.lt.u32.totalorder %s5042_s29, %s5346_s4 }
 0x204   : > { %p4073_p11 = scmp.lt.u32.totalorder %s4071_s17, %s4067_s25  ;;  %p4075_p6 = scmp.lt.u32.totalorder %s4067_s25, %s5042_s29 }
 0x205   : > { %p4069_p2 = pnand %p4068_p1, %p4451_p10 }
 0x206   : > { %p4074_p4 = por %p4073_p11, %p4072_p7 }
 0x207   : > { %p4070_p3 = pneg %p4069_p2 }
 0x208   : > { %p4076_p8 = por %p4075_p6, %p4074_p4 }
 0x20a   : > { %p4077_p12 = pnand %p4076_p8, %p4070_p3 }
 0x20c   : > { %4080 = shalt.err (!%p4077_p12)
}
 0x20d   : > { %s4301_s0 = smov 64   ;;  %s4302_s20 = smov 4   ;;  %v2566_v39 = vrot.slane %v2565_v5, 4  ;;  %v2589_v40 = vadd.f32 %v2588_v63, %v2581_v33  ;;  %v2767_v31 = vpop.f32.mrb[58].mxu1  ;;  %2815 = vst [vmem:[%s5016_s19 + $0x20] sm:$0xf] %v3413_v48  ;;  %v2832_v54 = vadd.f32 %v2831_v42, %v2824_v50  ;;  %v2848_v3 = vmul.f32 %v2824_v50, %v2764_v46 }
 0x20e   : > { %s5347_s22 = scalar_lea.sflag [#allocation5], %s4508_s26  ;;  %v3741_v55 = vpop.f32.mrb[59].mxu1  ;;  %s5348_s25 = sand.u32 1, %s4389_s15  }
 0x20f   : > { %3754 = dma.vmem_to_hbm [thread:$0]  (%p4451_p10), %s5031_s24, 576, %s5042_s29, %s5347_s22, %s4301_s0, %s4301_s0, %s4302_s20   ;;  %v2567_v57 = vadd.f32 %v2566_v39, %v2565_v5  ;;  %v2590_v58 = vrot.slane %v2589_v40, 4 }
 0x210   : > { %s5086_s1 = scalar_lea.sflag [#allocation13], %s5348_s25  ;;  %s4081_s30 = scalar_lea.vmem %s5044_s27, 576 }
 0x211   : > { %p4082_p13 = scmp.ne.s32.totalorder %s5044_s27, %s4081_s30  ;;  %s4303_s17 = smov [#allocation12]  }
 0x212   : > { %s4085_s24 = sshll.u32 %s4303_s17, 4  ;;  %s4086_s24 = int_to_ptr.vmem [resolvable:$false] %s4085_s24 }
 0x213   : > { %p4083_p0 = pnand %p4082_p13, %p4451_p10  ;;  %s4087_s29 = scalar_lea.vmem %s4086_s24, 1152 }
 0x214   : > { %p4088_p9 = scmp.lt.s32.totalorder %s5044_s27, %s4086_s24  ;;  %p4089_p1 = scmp.lt.s32.totalorder %s4087_s29, %s4081_s30 }
 0x215   : > { %p4084_p5 = pneg %p4083_p0 }
 0x216   : > { %p4090_p2 = por %p4089_p1, %p4088_p9 }
 0x218   : > { %p4091_p3 = pnand %p4090_p2, %p4084_p5 }
 0x21a   : > { %4094 = shalt.err (!%p4091_p3)
}
 0x21b   : > { %s4095_s19 = scalar_lea.hbm %s5054_s18, 576  ;;  %s4099_s25 = scalar_lea.hbm %s5296_s7, 1152 }
 0x21c   : > { %p4096_p7 = scmp.ne.s32.totalorder %s5054_s18, %s4095_s19  ;;  %p4100_p6 = scmp.lt.u32.totalorder %s5054_s18, %s5296_s7 }
 0x21d   : > { %p4101_p8 = scmp.lt.u32.totalorder %s4099_s25, %s4095_s19  ;;  %p4103_p13 = scmp.lt.u32.totalorder %s4095_s19, %s5054_s18 }
 0x21e   : > { %p4097_p11 = pnand %p4096_p7, %p4451_p10 }
 0x21f   : > { %p4102_p12 = por %p4101_p8, %p4100_p6 }
 0x220   : > { %p4098_p4 = pneg %p4097_p11 }
 0x221   : > { %p4104_p0 = por %p4103_p13, %p4102_p12 }
 0x223   : > { %p4105_p5 = pnand %p4104_p0, %p4098_p4 }
 0x225   : > { %4108 = shalt.err (!%p4105_p5)
}
 0x226   : > { %3757 = dma.vmem_to_hbm [thread:$0]  (%p4451_p10), %s5044_s27, 576, %s5054_s18, %s5086_s1, %s4301_s0, %s4301_s0, %s4302_s20   ;;  %v2833_v62 = vrot.slane %v2832_v54, 4  ;;  %v2856_v60 = vadd.f32 %v5046_v10, %v2848_v3  ;;  %v2568_v16 = vrot.slane %v2567_v57, 2  ;;  %v2591_v29 = vadd.f32 %v2590_v58, %v2589_v40 }
 0x227   : > { %s5115_s30 = sshll.u32 %s4283_s12, 4  ;;  %s425_s29 = scalar_lea.vmem [#allocation9], %s4508_s26 }
 0x228   : > { %v2834_v47 = vadd.f32 %v2833_v62, %v2832_v54  ;;  %v2857_v18 = vrot.slane %v2856_v60, 4  ;;  %v2569_v2 = vadd.f32 %v2568_v16, %v2567_v57  ;;  %v2592_v6 = vrot.slane %v2591_v29, 2  ;;  %s2917_s19 = sshll.u32 %s425_s29, 4  ;;  %s5122_s0 = scalar_lea.hbm %s5294_s5, %s5115_s30  ;;  %s5127_s19 = int_to_ptr.vmem [resolvable:$true] %s2917_s19 }
 0x229   : > { %s5307_s12 = scalar_lea.vmem [#allocation11], %s4508_s26  ;;  %s5308_s21 = scalar_lea.vmem [#allocation14], %s4508_s26 }
 0x22a   : > { %v2835_v34 = vrot.slane %v2834_v47, 2  ;;  %v2858_v49 = vadd.f32 %v2857_v18, %v2856_v60  ;;  %s2931_s20 = sshll.u32 %s5307_s12, 4  ;;  %v2593_v25 = vadd.f32 %v2592_v6, %v2591_v29  ;;  %v2570_v61 = vrot.slane %v2569_v2, 1  ;;  %s2962_s22 = sshll.u32 %s5308_s21, 4  ;;  %s5138_s20 = int_to_ptr.vmem [resolvable:$true] %s2931_s20  ;;  %s5153_s22 = int_to_ptr.vmem [resolvable:$true] %s2962_s22 }
 0x22b   : > { %s5136_s24 = scalar_lea.hbm %s5295_s6, %s5115_s30  ;;  %s5146_s12 = scalar_lea.hbm %s5297_s8, %s5115_s30 }
 0x22c   : > { %v2836_v59 = vadd.f32 %v2835_v34, %v2834_v47  ;;  %v2859_v52 = vrot.slane %v2858_v49, 2  ;;  %v2594_v8 = vrot.slane %v2593_v25, 1  ;;  %v2571_v12 = vadd.f32 %v2570_v61, %v2569_v2  ;;  %s5309_s21 = scalar_lea.vmem [#allocation15], %s4508_s26  ;;  %s5349_s25 = sand.u32 1, %s4389_s15  }
 0x22d   : > { %s5151_s2 = sshll.u32 %s5309_s21, 4  ;;  %s5158_s17 = scalar_lea.sflag [#allocation10], %s5349_s25  ;;  %s5191_s2 = int_to_ptr.vmem [resolvable:$true] %s5151_s2 }
 0x22e   : > { %v2837_v14 = vrot.slane %v2836_v59, 1  ;;  %v5140_v15 = vadd.f32 %v2859_v52, %v2858_v49  ;;  %2572 = vst [vmem:[%s425_s29] sm:$0x1] %v2571_v12  ;;  %v2595_v17 = vadd.f32 %v2594_v8, %v2593_v25  ;;  %s4109_s3 = scalar_lea.vmem %s5127_s19, 16  ;;  %s4304_s27 = smov [#allocation9]  }
 0x22f   : > { %p4110_p9 = scmp.ne.s32.totalorder %s5127_s19, %s4109_s3  ;;  %s4113_s18 = sshll.u32 %s4304_s27, 4  ;;  %s4114_s18 = int_to_ptr.vmem [resolvable:$false] %s4113_s18 }
 0x230   : > { %v2838_v21 = vadd.f32 %v2837_v14, %v2836_v59  ;;  %v2861_v51 = vrot.slane %v5140_v15, 1  ;;  %s4115_s21 = scalar_lea.vmem %s4114_s18, 32  ;;  %p4116_p3 = scmp.lt.s32.totalorder %s5127_s19, %s4114_s18 }
 0x231   : > { %p4111_p1 = pnand %p4110_p9, %p4451_p10  ;;  %p4117_p7 = scmp.lt.s32.totalorder %s4115_s21, %s4109_s3 }
 0x233   : > { %p4112_p2 = pneg %p4111_p1  ;;  %p4118_p11 = por %p4117_p7, %p4116_p3 }
 0x235   : > { %p4119_p4 = pnand %p4118_p11, %p4112_p2 }
 0x237   : > { %4122 = shalt.err (!%p4119_p4)
}
 0x238   : > { %s4123_s15 = scalar_lea.hbm %s5122_s0, 16  ;;  %s4127_s27 = scalar_lea.hbm %s5294_s5, 32 }
 0x239   : > { %p4124_p6 = scmp.ne.s32.totalorder %s5122_s0, %s4123_s15  ;;  %p4128_p13 = scmp.lt.u32.totalorder %s5122_s0, %s5294_s5 }
 0x23a   : > { %p4129_p0 = scmp.lt.u32.totalorder %s4127_s27, %s4123_s15  ;;  %p4131_p9 = scmp.lt.u32.totalorder %s4123_s15, %s5122_s0 }
 0x23b   : > { %p4125_p8 = pnand %p4124_p6, %p4451_p10 }
 0x23c   : > { %p4130_p5 = por %p4129_p0, %p4128_p13 }
 0x23d   : > { %p4126_p12 = pneg %p4125_p8 }
 0x23e   : > { %p4132_p1 = por %p4131_p9, %p4130_p5 }
 0x240   : > { %p4133_p2 = pnand %p4132_p1, %p4126_p12 }
 0x242   : > { %4136 = shalt.err (!%p4133_p2)
}
 0x243   : > { %3755 = dma.vmem_to_hbm [thread:$0]  (%p4451_p10), %s5127_s19, 16, %s5122_s0, %s5158_s17  }
 0x244   : > { %s5350_s3 = scalar_lea.vmem [#allocation11], %s4508_s26  ;;  %s5188_s15 = scalar_lea.hbm %s5298_s9, %s5115_s30 }
 0x245   : > { %2596 = vst [vmem:[%s5350_s3] sm:$0x1] %v2595_v17  ;;  %s4137_s29 = scalar_lea.vmem %s5138_s20, 16  ;;  %s4305_s25 = smov [#allocation11]  }
 0x246   : > { %p4138_p3 = scmp.ne.s32.totalorder %s5138_s20, %s4137_s29  ;;  %s4141_s27 = sshll.u32 %s4305_s25, 4  ;;  %s4142_s27 = int_to_ptr.vmem [resolvable:$false] %s4141_s27 }
 0x247   : > { %s4143_s18 = scalar_lea.vmem %s4142_s27, 32  ;;  %p4144_p4 = scmp.lt.s32.totalorder %s5138_s20, %s4142_s27 }
 0x248   : > { %p4139_p7 = pnand %p4138_p3, %p4451_p10  ;;  %p4145_p6 = scmp.lt.s32.totalorder %s4143_s18, %s4137_s29 }
 0x24a   : > { %p4140_p11 = pneg %p4139_p7  ;;  %p4146_p8 = por %p4145_p6, %p4144_p4 }
 0x24c   : > { %p4147_p12 = pnand %p4146_p8, %p4140_p11 }
 0x24e   : > { %4150 = shalt.err (!%p4147_p12)
}
 0x24f   : > { %s4151_s30 = scalar_lea.hbm %s5136_s24, 16  ;;  %s4155_s3 = scalar_lea.hbm %s5295_s6, 32 }
 0x250   : > { %p4152_p13 = scmp.ne.s32.totalorder %s5136_s24, %s4151_s30  ;;  %p4156_p9 = scmp.lt.u32.totalorder %s5136_s24, %s5295_s6 }
 0x251   : > { %p4157_p1 = scmp.lt.u32.totalorder %s4155_s3, %s4151_s30  ;;  %p4159_p3 = scmp.lt.u32.totalorder %s4151_s30, %s5136_s24 }
 0x252   : > { %p4153_p0 = pnand %p4152_p13, %p4451_p10 }
 0x253   : > { %p4158_p2 = por %p4157_p1, %p4156_p9 }
 0x254   : > { %p4154_p5 = pneg %p4153_p0 }
 0x255   : > { %p4160_p7 = por %p4159_p3, %p4158_p2 }
 0x257   : > { %p4161_p11 = pnand %p4160_p7, %p4154_p5 }
 0x259   : > { %4164 = shalt.err (!%p4161_p11)
}
 0x25a   : > { %3756 = dma.vmem_to_hbm [thread:$0]  (%p4451_p10), %s5138_s20, 16, %s5136_s24, %s5158_s17   ;;  %v2862_v43 = vadd.f32 %v2861_v51, %v5140_v15 }
 0x25b   : > { %s5351_s29 = scalar_lea.vmem [#allocation14], %s4508_s26  ;;  %s4165_s25 = scalar_lea.vmem %s5153_s22, 16 }
 0x25c   : > { %2839 = vst [vmem:[%s5351_s29] sm:$0x1] %v2838_v21  ;;  %p4166_p4 = scmp.ne.s32.totalorder %s5153_s22, %s4165_s25  ;;  %s4306_s27 = smov [#allocation14]  }
 0x25d   : > { %s4169_s18 = sshll.u32 %s4306_s27, 4  ;;  %s4170_s18 = int_to_ptr.vmem [resolvable:$false] %s4169_s18 }
 0x25e   : > { %p4167_p6 = pnand %p4166_p4, %p4451_p10  ;;  %s4171_s30 = scalar_lea.vmem %s4170_s18, 32 }
 0x25f   : > { %p4172_p12 = scmp.lt.s32.totalorder %s5153_s22, %s4170_s18  ;;  %p4173_p13 = scmp.lt.s32.totalorder %s4171_s30, %s4165_s25 }
 0x260   : > { %p4168_p8 = pneg %p4167_p6 }
 0x261   : > { %p4174_p0 = por %p4173_p13, %p4172_p12 }
 0x263   : > { %p4175_p5 = pnand %p4174_p0, %p4168_p8 }
 0x265   : > { %4178 = shalt.err (!%p4175_p5)
}
 0x266   : > { %s4179_s20 = scalar_lea.hbm %s5146_s12, 16  ;;  %s4183_s19 = scalar_lea.hbm %s5297_s8, 32 }
 0x267   : > { %p4180_p9 = scmp.ne.s32.totalorder %s5146_s12, %s4179_s20  ;;  %p4184_p3 = scmp.lt.u32.totalorder %s5146_s12, %s5297_s8 }
 0x268   : > { %p4185_p7 = scmp.lt.u32.totalorder %s4183_s19, %s4179_s20  ;;  %p4187_p4 = scmp.lt.u32.totalorder %s4179_s20, %s5146_s12 }
 0x269   : > { %p4181_p1 = pnand %p4180_p9, %p4451_p10 }
 0x26a   : > { %p4186_p11 = por %p4185_p7, %p4184_p3 }
 0x26b   : > { %p4182_p2 = pneg %p4181_p1 }
 0x26c   : > { %p4188_p6 = por %p4187_p4, %p4186_p11 }
 0x26e   : > { %p4189_p8 = pnand %p4188_p6, %p4182_p2 }
 0x270   : > { %4192 = shalt.err (!%p4189_p8)
}
 0x271   : > { %3758 = dma.vmem_to_hbm [thread:$0]  (%p4451_p10), %s5153_s22, 16, %s5146_s12, %s5086_s1  }
 0x272   : > { %s5352_s4 = scalar_lea.vmem [#allocation15], %s4508_s26  ;;  %s2887_s21 = scalar_lea.sflag [#allocation16], %s4508_s26 }
 0x273   : > { %2863 = vst [vmem:[%s5352_s4] sm:$0x1] %v2862_v43  ;;  %s4193_s29 = scalar_lea.vmem %s5191_s2, 16  ;;  %s4307_s25 = smov [#allocation15]  }
 0x274   : > { %p4194_p12 = scmp.ne.s32.totalorder %s5191_s2, %s4193_s29  ;;  %s4197_s27 = sshll.u32 %s4307_s25, 4  ;;  %s4198_s27 = int_to_ptr.vmem [resolvable:$false] %s4197_s27 }
 0x275   : > { %s4199_s18 = scalar_lea.vmem %s4198_s27, 32  ;;  %p4200_p5 = scmp.lt.s32.totalorder %s5191_s2, %s4198_s27 }
 0x276   : > { %p4195_p13 = pnand %p4194_p12, %p4451_p10  ;;  %p4201_p9 = scmp.lt.s32.totalorder %s4199_s18, %s4193_s29 }
 0x278   : > { %p4196_p0 = pneg %p4195_p13  ;;  %p4202_p1 = por %p4201_p9, %p4200_p5 }
 0x27a   : > { %p4203_p2 = pnand %p4202_p1, %p4196_p0 }
 0x27c   : > { %4206 = shalt.err (!%p4203_p2)
}
 0x27d   : > { %s4207_s26 = scalar_lea.hbm %s5188_s15, 16  ;;  %s4211_s22 = scalar_lea.hbm %s5298_s9, 32 }
 0x27e   : > { %p4208_p3 = scmp.ne.s32.totalorder %s5188_s15, %s4207_s26  ;;  %p4212_p4 = scmp.lt.u32.totalorder %s5188_s15, %s5298_s9 }
 0x27f   : > { %p4213_p6 = scmp.lt.u32.totalorder %s4211_s22, %s4207_s26  ;;  %p4215_p12 = scmp.lt.u32.totalorder %s4207_s26, %s5188_s15 }
 0x280   : > { %p4209_p7 = pnand %p4208_p3, %p4451_p10 }
 0x281   : > { %p4214_p8 = por %p4213_p6, %p4212_p4 }
 0x282   : > { %p4210_p11 = pneg %p4209_p7 }
 0x283   : > { %p4216_p13 = por %p4215_p12, %p4214_p8 }
 0x285   : > { %p4217_p0 = pnand %p4216_p13, %p4210_p11 }
 0x287   : > { %4220 = shalt.err (!%p4217_p0)
}
 0x288   : > { %3759 = dma.vmem_to_hbm [thread:$0]  (%p4451_p10), %s5191_s2, 16, %s5188_s15, %s2887_s21  }
 0x289 PF: > { %s5353_s24 = sld [smem:[#allocation23_spill]]  ;;  %s5354_s17 = sld [smem:[#allocation24_spill]] }
 0x28a   : > { %p5356_p9 = scmp.ge.s32.totalorder %s4291_s14, 2 }
 0x28f   : > { %s2988_s19 = sand.u32 1, %s5353_s24   ;;  %p5355_p5 = scmp.ne.s32.totalorder %s5354_s17, 0 }
 0x290   : > { %s2989_s0 = scalar_lea.sflag [#allocation5], %s2988_s19 }
 0x291   : > { %p3775_p1 = pnand %p5356_p9, %p5355_p5 }
 0x293   : > { %4254 = dma.done.wait (!%p3775_p1), %s2989_s0, 576  }
 0x294   : > { %4256 = vsyncadd (!%p3775_p1), %s2989_s0, 4294966720  ;;  %s5357_s3 = sadd.s32 4294967294, %s4291_s14  }
 0x295   : > { %s2997_s4 = sand.u32 1, %s5357_s3  }
 0x296   : > { %s2998_s29 = scalar_lea.sflag [#allocation10], %s2997_s4 }
 0x297   : > { %4258 = dma.done.wait (!%p3775_p1), %s2998_s29, 32  }
 0x298   : > { %4260 = vsyncadd (!%p3775_p1), %s2998_s29, 4294967264  ;;  %s3014_s28 = scalar_lea.sflag [#allocation13], %s2997_s4 }
 0x299   : > { %4262 = dma.done.wait (!%p3775_p1), %s3014_s28, 592  }
 0x29a   : > { %4264 = vsyncadd (!%p3775_p1), %s3014_s28, 4294966704  ;;  %s3031_s2 = scalar_lea.sflag [#allocation16], %s2988_s19 }
 0x29b   : > { %4266 = dma.done.wait (!%p3775_p1), %s3031_s2, 16  }
 0x29c   : > { %4268 = vsyncadd (!%p3775_p1), %s3031_s2, 4294967280  ;;  %s36_s14 = sadd.s32 1, %s4291_s14   ;;  %s5358_s30 = smov %s4275_s10 }
 0x29d   : > { %p33_p10 = scmp.ge.s32.totalorder %s36_s14, 4   ;;  %s5359_s10 = smov %s4279_s11 }
 0x29e   : > { %s5360_s11 = smov %s4460_s16  ;;  %s5361_s12 = smov %s4287_s13 }
 0x29f   : > { %s5362_s13 = smov %s5364_s23  ;;  %35 = sbr.rel (!%p33_p10) target bundleno = 19 (0x13), region = 170 }
 0x2a6   :  { %3035 = vsyncpa [#allocation4], 1 }
 0x2a7   :  { %3037 = vsyncpa [#allocation4 + $0x1], 1 }
 0x2a8   :  { %3038 = vsyncpa [#allocation7], 1 }
 0x2a9   :  { %3039 = vsyncpa [#allocation5], 1 }
 0x2aa   :  { %3041 = vsyncpa [#allocation5 + $0x1], 1 }
 0x2ab   :  { %3042 = vsyncpa [#allocation10], 1 }
 0x2ac   :  { %3044 = vsyncpa [#allocation10 + $0x1], 1 }
 0x2ad   :  { %3045 = vsyncpa [#allocation13], 1 }
 0x2ae   :  { %3047 = vsyncpa [#allocation13 + $0x1], 1 }
 0x2af   :  { %3048 = vsyncpa [#allocation16], 1 }
 0x2b0   :  { %3050 = vsyncpa [#allocation16 + $0x1], 1 }

</bundles_post_ra>
